<compile_context>
chip_gen: v6e
topology: v6e:2x2x1
jax: 0.10.0
libtpu: 0.0.40
codegen_flags: <defaults>
</compile_context>

<pallas_src>
import functools
import math

import jax
import jax.numpy as jnp
from jax.experimental import pallas as pl
from jax.experimental.pallas import tpu as pltpu


# ----------------------------- helpers ------------------------------------- #

def _layer_norm(v, g, b, eps):
    # stats in f32, biased variance (matches torch LayerNorm)
    mu = jnp.mean(v, axis=-1, keepdims=True)
    var = jnp.mean((v - mu) ** 2, axis=-1, keepdims=True)
    return (v - mu) * jax.lax.rsqrt(var + eps) * g + b


def _gelu_tanh(x):
    # TODO(synk): PyTorch nn.GELU default is exact (erf-based); tanh approx is
    #             used for robust TPU lowering (difference ~1e-3).
    c = math.sqrt(2.0 / math.pi)
    return 0.5 * x * (1.0 + jnp.tanh(c * (x + 0.044715 * x * x * x)))


def _pick_block_b(B, S, target_rows=256):
    """Largest divisor of B so that Bt*S ~ target matmul M rows (fills the
    256-wide MXU on v6e/v7x), while keeping >= 2 batch blocks when possible so
    the 'parallel' grid axis can be split across v7x's two TensorCores."""
    bt = max(1, min(B, max(1, target_rows // max(S, 1))))
    while B % bt:
        bt -= 1
    if B >= 2 and B // bt < 2:
        bt = max(1, bt // 2)
        while B % bt:
            bt -= 1
    return bt


def _default_vmem_limit_bytes():
    """~0.8 * physical VMEM, capped at 100 MiB (v5e/v6e: 128 MiB -> 100 MiB;
    v7x: 64 MiB -> ~51 MiB)."""
    cap = 128 * 1024 * 1024
    try:
        cap = int(pltpu.get_tpu_info().vmem_capacity_bytes)
    except Exception:
        pass
    return max(32 * 1024 * 1024, min(100 * 1024 * 1024, int(cap * 0.8)))


# ----------------------------- fused stack kernel --------------------------- #

def transformer_stack_kernel(
        x_ref, pad_ref,
        ln1g_ref, ln1b_ref, wqkv_ref, bqkv_ref, wo_ref, bo_ref,
        ln2g_ref, ln2b_ref, w1_ref, b1_ref, w2_ref, b2_ref,
        fng_ref, fnb_ref,
        o_ref,
        res_ref,                       # VMEM scratch (Bt*S, D) f32: residual stream
        *, num_heads, norm_eps):
    layer = pl.program_id(1)
    n_layers = pl.num_programs(1)

    Bt, S, D = x_ref.shape
    M = Bt * S
    dh = D // num_heads
    scale = 1.0 / math.sqrt(dh)

    # Layer 0: initialize the f32 residual stream scratch (resident across depth).
    @pl.when(layer == 0)
    def _():
        res_ref[...] = x_ref[...].astype(jnp.float32).reshape(M, D)

    x = res_ref[...]                   # f32 residual, never truncated between layers
    pad = pad_ref[...]                 # (Bt, 1, S) additive key bias, f32

    # ---------------- attention sub-block (pre-LN) ---------------- #
    h = _layer_norm(x, ln1g_ref[0], ln1b_ref[0], norm_eps).astype(jnp.bfloat16)
    # fused QKV projection: one MXU pass with N = 3D (f32 accumulate)
    qkv = (jnp.dot(h, wqkv_ref[0], preferred_element_type=jnp.float32)
           + bqkv_ref[0]).reshape(Bt, S, 3 * D)
    # one bf16 cast; the f32 qkv is dead after this.  1/sqrt(dh) folded into q
    # (one (Bt,S,D) multiply instead of scaling every (Bt,S,S) score matrix).
    q16 = (qkv[:, :, :D] * scale).astype(jnp.bfloat16)
    k16 = qkv[:, :, D:2 * D].astype(jnp.bfloat16)
    v16 = qkv[:, :, 2 * D:].astype(jnp.bfloat16)

    # Per-head attention with Bt-batched einsums.  Each head's context is
    # immediately contracted against its (dh, D) slice of the output projection
    # and accumulated into a lane-dense (M, D) f32 accumulator, so there are no
    # masked sub-lane-width stores and each head's [S,S] scores die in-iteration.
    attn = jnp.broadcast_to(bo_ref[0], (M, D)).astype(jnp.float32)
    for hd in range(num_heads):        # static loop over heads only
        c0 = hd * dh
        qh = q16[:, :, c0:c0 + dh]
        kh = k16[:, :, c0:c0 + dh]
        vh = v16[:, :, c0:c0 + dh]
        s = jnp.einsum('bqd,bkd->bqk', qh, kh,
                       preferred_element_type=jnp.float32)      # (Bt, S, S) f32
        s = s + pad
        s = s - jnp.max(s, axis=-1, keepdims=True)
        p = jnp.exp(s)
        p = p * pl.reciprocal(jnp.sum(p, axis=-1, keepdims=True), approx=True)
        ctx = jnp.einsum('bqk,bkd->bqd', p.astype(jnp.bfloat16), vh,
                         preferred_element_type=jnp.float32)    # (Bt, S, dh)
        attn = attn + jnp.dot(ctx.reshape(M, dh).astype(jnp.bfloat16),
                              wo_ref[0, c0:c0 + dh, :],
                              preferred_element_type=jnp.float32)
    x = x + attn

    # ---------------- feed-forward sub-block (pre-LN) ---------------- #
    h2 = _layer_norm(x, ln2g_ref[0], ln2b_ref[0], norm_eps).astype(jnp.bfloat16)
    h2 = jnp.dot(h2, w1_ref[0], preferred_element_type=jnp.float32) + b1_ref[0]
    h2 = _gelu_tanh(h2).astype(jnp.bfloat16)
    x = x + (jnp.dot(h2, w2_ref[0], preferred_element_type=jnp.float32) + b2_ref[0])

    # keep the f32 residual resident in VMEM across the depth axis
    res_ref[...] = x

    # fused final LayerNorm; o_ref is written exactly once per batch block
    @pl.when(layer == n_layers - 1)
    def _():
        y = _layer_norm(x, fng_ref[...], fnb_ref[...], norm_eps)
        o_ref[...] = y.reshape(Bt, S, D).astype(o_ref.dtype)


# ----------------------------- wrapper -------------------------------------- #

_WEIGHT_NAMES = ["ln1_g", "ln1_b", "wqkv", "bqkv", "wo", "bo",
                 "ln2_g", "ln2_b", "w1", "b1", "w2", "b2"]


def transformer_forward(x, params, *, num_heads, norm_eps=1e-5,
                        padding_mask=None, block_b=None, vmem_limit_bytes=None):
    """Full Transformer forward: depth fused blocks + final LayerNorm, one pallas_call."""
    B, S, D = x.shape
    depth = params["wqkv"].shape[0]

    if padding_mask is None:
        pad_bias = jnp.zeros((B, 1, S), jnp.float32)
    else:
        pad_bias = jnp.where(padding_mask, -1e9, 0.0).astype(jnp.float32)[:, None, :]

    if block_b is None:
        block_b = _pick_block_b(B, S)
    assert B % block_b == 0

    if vmem_limit_bytes is None:
        vmem_limit_bytes = _default_vmem_limit_bytes()

    kernel = functools.partial(transformer_stack_kernel,
                               num_heads=num_heads, norm_eps=norm_eps)

    weight_specs = [
        pl.BlockSpec((1,) + params[n].shape[1:], lambda b, l: (l, 0, 0))
        for n in _WEIGHT_NAMES
    ]
    final_specs = [pl.BlockSpec(params["norm_g"].shape, lambda b, l: (0, 0)),
                   pl.BlockSpec(params["norm_b"].shape, lambda b, l: (0, 0))]

    grid = (B // block_b, depth)
    return pl.pallas_call(
        kernel,
        out_shape=jax.ShapeDtypeStruct((B, S, D), x.dtype),
        grid=grid,
        in_specs=[pl.BlockSpec((block_b, S, D), lambda b, l: (b, 0, 0)),
                  pl.BlockSpec((block_b, 1, S), lambda b, l: (b, 0, 0))]
                 + weight_specs + final_specs,
        out_specs=pl.BlockSpec((block_b, S, D), lambda b, l: (b, 0, 0)),
        scratch_shapes=[pltpu.VMEM((block_b * S, D), jnp.float32)],
        compiler_params=pltpu.CompilerParams(
            dimension_semantics=("parallel", "arbitrary"),
            vmem_limit_bytes=vmem_limit_bytes),
    )(x, pad_bias, *[params[n] for n in _WEIGHT_NAMES],
      params["norm_g"], params["norm_b"])


# ----------------------------- reference (pure JAX) -------------------------- #

def transformer_reference(x, params, *, num_heads, norm_eps=1e-5, padding_mask=None):
    """Pure-JAX reference with the same bf16 matmul-operand / f32-accumulate numerics."""
    B, S, D = x.shape
    H = num_heads
    dh = D // H
    depth = params["wqkv"].shape[0]
    scale = 1.0 / math.sqrt(dh)

    if padding_mask is None:
        pad = jnp.zeros((B, 1, S), jnp.float32)
    else:
        pad = jnp.where(padding_mask, -1e9, 0.0).astype(jnp.float32)[:, None, :]

    def mm(a, w):
        return jnp.dot(a.astype(jnp.bfloat16), w.astype(jnp.bfloat16),
                       preferred_element_type=jnp.float32)

    x = x.astype(jnp.float32)
    for l in range(depth):
        h = _layer_norm(x, params["ln1_g"][l], params["ln1_b"][l], norm_eps)
        qkv = mm(h, params["wqkv"][l]) + params["bqkv"][l]
        q = (qkv[..., :D] * scale).reshape(B, S, H, dh)
        k = qkv[..., D:2 * D].reshape(B, S, H, dh)
        v = qkv[..., 2 * D:].reshape(B, S, H, dh)
        s = jnp.einsum("bqhd,bkhd->bhqk",
                       q.astype(jnp.bfloat16), k.astype(jnp.bfloat16),
                       preferred_element_type=jnp.float32)
        s = s + pad[:, :, None, :]
        p = jax.nn.softmax(s, axis=-1)
        o = jnp.einsum("bhqk,bkhd->bqhd",
                       p.astype(jnp.bfloat16), v.astype(jnp.bfloat16),
                       preferred_element_type=jnp.float32).reshape(B, S, D)
        x = x + mm(o, params["wo"][l]) + params["bo"][l]
        h2 = _layer_norm(x, params["ln2_g"][l], params["ln2_b"][l], norm_eps)
        h2 = _gelu_tanh(mm(h2, params["w1"][l]) + params["b1"][l])
        x = x + mm(h2, params["w2"][l]) + params["b2"][l]
    return _layer_norm(x, params["norm_g"], params["norm_b"], norm_eps)


# ----------------------------- parameter init -------------------------------- #

def init_params(key, dim, depth, mlp_dim):
    """Stacked per-layer parameters.  Matmul weights stored in bf16; LN params,
    biases in f32 (added after the f32-accumulating matmul)."""
    ks = jax.random.split(key, 12)

    def w(k, shape, scale=0.05):
        return (scale * jax.random.normal(k, shape, jnp.float32)).astype(jnp.bfloat16)

    def b(k, shape, scale=0.02):
        return scale * jax.random.normal(k, shape, jnp.float32)

    return {
        "ln1_g": 1.0 + 0.05 * jax.random.normal(ks[0], (depth, 1, dim), jnp.float32),
        "ln1_b": b(ks[1], (depth, 1, dim)),
        "wqkv": w(ks[2], (depth, dim, 3 * dim)),
        "bqkv": b(ks[3], (depth, 1, 3 * dim)),
        "wo": w(ks[4], (depth, dim, dim)),
        "bo": b(ks[5], (depth, 1, dim)),
        "ln2_g": 1.0 + 0.05 * jax.random.normal(ks[6], (depth, 1, dim), jnp.float32),
        "ln2_b": b(ks[7], (depth, 1, dim)),
        "w1": w(ks[8], (depth, dim, mlp_dim)),
        "b1": b(ks[9], (depth, 1, mlp_dim)),
        "w2": w(ks[10], (depth, mlp_dim, dim)),
        "b2": b(ks[11], (depth, 1, dim)),
        "norm_g": jnp.ones((1, dim), jnp.float32),
        "norm_b": jnp.zeros((1, dim), jnp.float32),
    }


# ----------------------------- main ------------------------------------------ #

if __name__ == "__main__":
    # NOTE: real configs should use D, mlp_dim multiples of 128 and S multiple
    # of 8/16 for lane-dense stores; this demo uses small spec-consistent shapes.
    B, S, DIM, HEADS, DEPTH = 2, 8, 32, 4, 2
    MLP_DIM = 4 * DIM  # Transformer default: mlp_dim = 4 * dim

    key = jax.random.PRNGKey(0)
    kx, kp = jax.random.split(key)
    x = jax.random.normal(kx, (B, S, DIM), jnp.float32)
    params = init_params(kp, DIM, DEPTH, MLP_DIM)

    # --- no mask ---
    out = jax.block_until_ready(
        transformer_forward(x, params, num_heads=HEADS, norm_eps=1e-5))
    ref = jax.block_until_ready(
        transformer_reference(x, params, num_heads=HEADS, norm_eps=1e-5))
    assert out.shape == (B, S, DIM)
    err = float(jnp.max(jnp.abs(out - ref)))
    # tolerance budget: approx reciprocal (~1e-3 rel) + bf16 operand rounding +
    # per-head f32 accumulation order
    assert err < 1e-2, f"max err {err}"

    # --- with key_padding_mask (True = ignore) ---
    mask = jnp.zeros((B, S), dtype=bool).at[1, -2:].set(True)
    out_m = jax.block_until_ready(
        transformer_forward(x, params, num_heads=HEADS, norm_eps=1e-5,
                            padding_mask=mask))
    ref_m = transformer_reference(x, params, num_heads=HEADS, norm_eps=1e-5,
                                  padding_mask=mask)
    err_m = float(jnp.max(jnp.abs(out_m - ref_m)))
    assert err_m < 1e-2, f"max err (masked) {err_m}"

    print("KERNEL_OK")
</pallas_src>

<mosaic_0001>
module attributes {stable_mosaic.version = 11 : i64} {
  func.func @transformer_stack_kernel(%arg0: i32, %arg1: i32, %arg2: memref<1x8x32xf32, #tpu.memory_space<vmem>>, %arg3: memref<1x1x8xf32, #tpu.memory_space<vmem>>, %arg4: memref<1x1x32xf32, #tpu.memory_space<vmem>>, %arg5: memref<1x1x32xf32, #tpu.memory_space<vmem>>, %arg6: memref<1x32x96xbf16, #tpu.memory_space<vmem>>, %arg7: memref<1x1x96xf32, #tpu.memory_space<vmem>>, %arg8: memref<1x32x32xbf16, #tpu.memory_space<vmem>>, %arg9: memref<1x1x32xf32, #tpu.memory_space<vmem>>, %arg10: memref<1x1x32xf32, #tpu.memory_space<vmem>>, %arg11: memref<1x1x32xf32, #tpu.memory_space<vmem>>, %arg12: memref<1x32x128xbf16, #tpu.memory_space<vmem>>, %arg13: memref<1x1x128xf32, #tpu.memory_space<vmem>>, %arg14: memref<1x128x32xbf16, #tpu.memory_space<vmem>>, %arg15: memref<1x1x32xf32, #tpu.memory_space<vmem>>, %arg16: memref<1x32xf32, #tpu.memory_space<vmem>>, %arg17: memref<1x32xf32, #tpu.memory_space<vmem>>, %arg18: memref<1x8x32xf32, #tpu.memory_space<vmem>>, %arg19: memref<8x32xf32, #tpu.memory_space<vmem>>) attributes {dimension_semantics = [#tpu.dimension_semantics<parallel>, #tpu.dimension_semantics<arbitrary>], iteration_bounds = array<i64: 2, 2>, scalar_prefetch = 0 : i64, scratch_operands = 1 : i64, tpu.core_type = #tpu.core_type<tc>, window_params = [{transform_indices = @transform_0, window_bounds = array<i64: 1, 8, 32>}, {transform_indices = @transform_1, window_bounds = array<i64: 1, 1, 8>}, {transform_indices = @transform_2, window_bounds = array<i64: 1, 1, 32>}, {transform_indices = @transform_3, window_bounds = array<i64: 1, 1, 32>}, {transform_indices = @transform_4, window_bounds = array<i64: 1, 32, 96>}, {transform_indices = @transform_5, window_bounds = array<i64: 1, 1, 96>}, {transform_indices = @transform_6, window_bounds = array<i64: 1, 32, 32>}, {transform_indices = @transform_7, window_bounds = array<i64: 1, 1, 32>}, {transform_indices = @transform_8, window_bounds = array<i64: 1, 1, 32>}, {transform_indices = @transform_9, window_bounds = array<i64: 1, 1, 32>}, {transform_indices = @transform_10, window_bounds = array<i64: 1, 32, 128>}, {transform_indices = @transform_11, window_bounds = array<i64: 1, 1, 128>}, {transform_indices = @transform_12, window_bounds = array<i64: 1, 128, 32>}, {transform_indices = @transform_13, window_bounds = array<i64: 1, 1, 32>}, {pipeline_mode = #tpu.pipeline_mode<synchronous>, transform_indices = @transform_14, window_bounds = array<i64: 1, 32>}, {pipeline_mode = #tpu.pipeline_mode<synchronous>, transform_indices = @transform_15, window_bounds = array<i64: 1, 32>}, {transform_indices = @transform_16, window_bounds = array<i64: 1, 8, 32>}]} {
    %c0_i32 = arith.constant 0 : i32
    %0 = arith.cmpi eq, %arg1, %c0_i32 : i32
    %1 = arith.extui %0 : i1 to i32
    %c0_i32_0 = arith.constant 0 : i32
    %2 = arith.cmpi ne, %1, %c0_i32_0 : i32
    scf.if %2 {
      %c0_87 = arith.constant 0 : index
      %c0_88 = arith.constant 0 : index
      %c0_89 = arith.constant 0 : index
      %209 = vector.load %arg2[%c0_87, %c0_88, %c0_89] : memref<1x8x32xf32, #tpu.memory_space<vmem>>, vector<1x8x32xf32>
      %210 = vector.shape_cast %209 : vector<1x8x32xf32> to vector<8x32xf32>
      %c0_90 = arith.constant 0 : index
      %c0_91 = arith.constant 0 : index
      %211 = vector.load %arg19[%c0_90, %c0_91] : memref<8x32xf32, #tpu.memory_space<vmem>>, vector<8x32xf32>
      tpu.vector_store %arg19[%c0_90, %c0_91], %210 {strides = array<i32>} : memref<8x32xf32, #tpu.memory_space<vmem>>, vector<8x32xf32>,
    } else {
    }
    %c0 = arith.constant 0 : index
    %c0_1 = arith.constant 0 : index
    %3 = vector.load %arg19[%c0, %c0_1] : memref<8x32xf32, #tpu.memory_space<vmem>>, vector<8x32xf32>
    %c0_2 = arith.constant 0 : index
    %c0_3 = arith.constant 0 : index
    %c0_4 = arith.constant 0 : index
    %4 = vector.load %arg3[%c0_2, %c0_3, %c0_4] : memref<1x1x8xf32, #tpu.memory_space<vmem>>, vector<1x1x8xf32>
    %c0_5 = arith.constant 0 : index
    %c0_6 = arith.constant 0 : index
    %c0_7 = arith.constant 0 : index
    %5 = vector.load %arg4[%c0_5, %c0_6, %c0_7] : memref<1x1x32xf32, #tpu.memory_space<vmem>>, vector<1x1x32xf32>
    %6 = vector.shape_cast %5 : vector<1x1x32xf32> to vector<1x32xf32>
    %c0_8 = arith.constant 0 : index
    %c0_9 = arith.constant 0 : index
    %c0_10 = arith.constant 0 : index
    %7 = vector.load %arg5[%c0_8, %c0_9, %c0_10] : memref<1x1x32xf32, #tpu.memory_space<vmem>>, vector<1x1x32xf32>
    %8 = vector.shape_cast %7 : vector<1x1x32xf32> to vector<1x32xf32>
    %cst = arith.constant dense<0.000000e+00> : vector<8xf32>
    %9 = vector.multi_reduction <add>, %3, %cst [1] : vector<8x32xf32> to vector<8xf32>
    %10 = vector.shape_cast %9 : vector<8xf32> to vector<8x1xf32>
    %cst_11 = arith.constant 3.200000e+01 : f32
    %11 = vector.broadcast %cst_11 : f32 to vector<8x1xf32>
    %12 = arith.divf %10, %11 : vector<8x1xf32>
    %13 = vector.broadcast %12 : vector<8x1xf32> to vector<8x32xf32>
    %14 = arith.subf %3, %13 : vector<8x32xf32>
    %15 = arith.mulf %14, %14 : vector<8x32xf32>
    %cst_12 = arith.constant dense<0.000000e+00> : vector<8xf32>
    %16 = vector.multi_reduction <add>, %15, %cst_12 [1] : vector<8x32xf32> to vector<8xf32>
    %17 = vector.shape_cast %16 : vector<8xf32> to vector<8x1xf32>
    %cst_13 = arith.constant 3.200000e+01 : f32
    %18 = vector.broadcast %cst_13 : f32 to vector<8x1xf32>
    %19 = arith.divf %17, %18 : vector<8x1xf32>
    %20 = vector.broadcast %12 : vector<8x1xf32> to vector<8x32xf32>
    %21 = arith.subf %3, %20 : vector<8x32xf32>
    %cst_14 = arith.constant 9.99999974E-6 : f32
    %22 = vector.broadcast %cst_14 : f32 to vector<8x1xf32>
    %23 = arith.addf %19, %22 : vector<8x1xf32>
    %24 = math.rsqrt %23 : vector<8x1xf32>
    %25 = vector.broadcast %24 : vector<8x1xf32> to vector<8x32xf32>
    %26 = arith.mulf %21, %25 : vector<8x32xf32>
    %27 = vector.broadcast %6 : vector<1x32xf32> to vector<8x32xf32>
    %28 = arith.mulf %26, %27 : vector<8x32xf32>
    %29 = vector.broadcast %8 : vector<1x32xf32> to vector<8x32xf32>
    %30 = arith.addf %28, %29 : vector<8x32xf32>
    %31 = arith.truncf %30 : vector<8x32xf32> to vector<8x32xbf16>
    %c0_15 = arith.constant 0 : index
    %c0_16 = arith.constant 0 : index
    %c0_17 = arith.constant 0 : index
    %32 = vector.load %arg6[%c0_15, %c0_16, %c0_17] : memref<1x32x96xbf16, #tpu.memory_space<vmem>>, vector<1x32x96xbf16>
    %33 = vector.shape_cast %32 : vector<1x32x96xbf16> to vector<32x96xbf16>
    %cst_18 = arith.constant dense<0.000000e+00> : vector<8x96xf32>
    %34 = tpu.matmul %31, %33, %cst_18 {dimension_numbers = #tpu.dot_dimension_numbers<[1], [0], [0], [1], [0, 0, 1, 1], [], []>} : vector<8x32xbf16>, vector<32x96xbf16>, vector<8x96xf32> -> vector<8x96xf32>
    %c0_19 = arith.constant 0 : index
    %c0_20 = arith.constant 0 : index
    %c0_21 = arith.constant 0 : index
    %35 = vector.load %arg7[%c0_19, %c0_20, %c0_21] : memref<1x1x96xf32, #tpu.memory_space<vmem>>, vector<1x1x96xf32>
    %36 = vector.shape_cast %35 : vector<1x1x96xf32> to vector<1x96xf32>
    %37 = vector.broadcast %36 : vector<1x96xf32> to vector<8x96xf32>
    %38 = arith.addf %34, %37 : vector<8x96xf32>
    %39 = vector.shape_cast %38 : vector<8x96xf32> to vector<1x8x96xf32>
    %40 = vector.extract_strided_slice %39 {offsets = [0, 0, 0], sizes = [1, 8, 32], strides = [1, 1, 1]} : vector<1x8x96xf32> to vector<1x8x32xf32>
    %cst_22 = arith.constant 0.353553385 : f32
    %41 = vector.broadcast %cst_22 : f32 to vector<1x8x32xf32>
    %42 = arith.mulf %40, %41 : vector<1x8x32xf32>
    %43 = arith.truncf %42 : vector<1x8x32xf32> to vector<1x8x32xbf16>
    %44 = vector.extract_strided_slice %39 {offsets = [0, 0, 32], sizes = [1, 8, 32], strides = [1, 1, 1]} : vector<1x8x96xf32> to vector<1x8x32xf32>
    %45 = arith.truncf %44 : vector<1x8x32xf32> to vector<1x8x32xbf16>
    %46 = vector.extract_strided_slice %39 {offsets = [0, 0, 64], sizes = [1, 8, 32], strides = [1, 1, 1]} : vector<1x8x96xf32> to vector<1x8x32xf32>
    %47 = arith.truncf %46 : vector<1x8x32xf32> to vector<1x8x32xbf16>
    %c0_23 = arith.constant 0 : index
    %c0_24 = arith.constant 0 : index
    %c0_25 = arith.constant 0 : index
    %48 = vector.load %arg9[%c0_23, %c0_24, %c0_25] : memref<1x1x32xf32, #tpu.memory_space<vmem>>, vector<1x1x32xf32>
    %49 = vector.shape_cast %48 : vector<1x1x32xf32> to vector<1x32xf32>
    %50 = vector.shape_cast %49 : vector<1x32xf32> to vector<1x32xf32>
    %51 = vector.broadcast %50 : vector<1x32xf32> to vector<8x32xf32>
    %52 = vector.extract_strided_slice %43 {offsets = [0, 0, 0], sizes = [1, 8, 8], strides = [1, 1, 1]} : vector<1x8x32xbf16> to vector<1x8x8xbf16>
    %53 = vector.extract_strided_slice %45 {offsets = [0, 0, 0], sizes = [1, 8, 8], strides = [1, 1, 1]} : vector<1x8x32xbf16> to vector<1x8x8xbf16>
    %54 = vector.extract_strided_slice %47 {offsets = [0, 0, 0], sizes = [1, 8, 8], strides = [1, 1, 1]} : vector<1x8x32xbf16> to vector<1x8x8xbf16>
    "tpu.trace_start"() <{level = 10 : i32, message = "bqd,bkd->bqk"}> : () -> ()
    %cst_26 = arith.constant dense<0.000000e+00> : vector<1x8x8xf32>
    %55 = tpu.matmul %52, %53, %cst_26 {dimension_numbers = #tpu.dot_dimension_numbers<[2], [2], [1], [1], [0, 0, 0, 1, 1, 1], [0], [0]>} : vector<1x8x8xbf16>, vector<1x8x8xbf16>, vector<1x8x8xf32> -> vector<1x8x8xf32>
    "tpu.trace_stop"() : () -> ()
    %56 = vector.broadcast %4 : vector<1x1x8xf32> to vector<1x8x8xf32>
    %57 = arith.addf %55, %56 : vector<1x8x8xf32>
    %cst_27 = arith.constant dense<0xFF800000> : vector<1x8xf32>
    %58 = vector.multi_reduction <maximumf>, %57, %cst_27 [2] : vector<1x8x8xf32> to vector<1x8xf32>
    %59 = vector.shape_cast %58 : vector<1x8xf32> to vector<1x8x1xf32>
    %60 = vector.broadcast %59 : vector<1x8x1xf32> to vector<1x8x8xf32>
    %61 = arith.subf %57, %60 : vector<1x8x8xf32>
    %62 = math.exp %61 : vector<1x8x8xf32>
    %cst_28 = arith.constant dense<0.000000e+00> : vector<1x8xf32>
    %63 = vector.multi_reduction <add>, %62, %cst_28 [2] : vector<1x8x8xf32> to vector<1x8xf32>
    %64 = vector.shape_cast %63 : vector<1x8xf32> to vector<1x8x1xf32>
    %65 = tpu.reciprocal %64 {approx = true} : vector<1x8x1xf32> -> vector<1x8x1xf32>
    %66 = vector.broadcast %65 : vector<1x8x1xf32> to vector<1x8x8xf32>
    %67 = arith.mulf %62, %66 : vector<1x8x8xf32>
    %68 = arith.truncf %67 : vector<1x8x8xf32> to vector<1x8x8xbf16>
    "tpu.trace_start"() <{level = 10 : i32, message = "bqk,bkd->bqd"}> : () -> ()
    %cst_29 = arith.constant dense<0.000000e+00> : vector<1x8x8xf32>
    %69 = tpu.matmul %68, %54, %cst_29 {dimension_numbers = #tpu.dot_dimension_numbers<[2], [1], [1], [2], [0, 0, 0, 1, 1, 2], [0], [0]>} : vector<1x8x8xbf16>, vector<1x8x8xbf16>, vector<1x8x8xf32> -> vector<1x8x8xf32>
    "tpu.trace_stop"() : () -> ()
    %70 = vector.shape_cast %69 : vector<1x8x8xf32> to vector<8x8xf32>
    %71 = arith.truncf %70 : vector<8x8xf32> to vector<8x8xbf16>
    %c0_30 = arith.constant 0 : index
    %c0_31 = arith.constant 0 : index
    %c0_32 = arith.constant 0 : index
    %72 = vector.load %arg8[%c0_30, %c0_31, %c0_32] : memref<1x32x32xbf16, #tpu.memory_space<vmem>>, vector<1x8x32xbf16>
    %73 = vector.shape_cast %72 : vector<1x8x32xbf16> to vector<8x32xbf16>
    %cst_33 = arith.constant dense<0.000000e+00> : vector<8x32xf32>
    %74 = tpu.matmul %71, %73, %cst_33 {dimension_numbers = #tpu.dot_dimension_numbers<[1], [0], [0], [1], [0, 0, 1, 1], [], []>} : vector<8x8xbf16>, vector<8x32xbf16>, vector<8x32xf32> -> vector<8x32xf32>
    %75 = arith.addf %51, %74 : vector<8x32xf32>
    %76 = vector.extract_strided_slice %43 {offsets = [0, 0, 8], sizes = [1, 8, 8], strides = [1, 1, 1]} : vector<1x8x32xbf16> to vector<1x8x8xbf16>
    %77 = vector.extract_strided_slice %45 {offsets = [0, 0, 8], sizes = [1, 8, 8], strides = [1, 1, 1]} : vector<1x8x32xbf16> to vector<1x8x8xbf16>
    %78 = vector.extract_strided_slice %47 {offsets = [0, 0, 8], sizes = [1, 8, 8], strides = [1, 1, 1]} : vector<1x8x32xbf16> to vector<1x8x8xbf16>
    "tpu.trace_start"() <{level = 10 : i32, message = "bqd,bkd->bqk"}> : () -> ()
    %cst_34 = arith.constant dense<0.000000e+00> : vector<1x8x8xf32>
    %79 = tpu.matmul %76, %77, %cst_34 {dimension_numbers = #tpu.dot_dimension_numbers<[2], [2], [1], [1], [0, 0, 0, 1, 1, 1], [0], [0]>} : vector<1x8x8xbf16>, vector<1x8x8xbf16>, vector<1x8x8xf32> -> vector<1x8x8xf32>
    "tpu.trace_stop"() : () -> ()
    %80 = vector.broadcast %4 : vector<1x1x8xf32> to vector<1x8x8xf32>
    %81 = arith.addf %79, %80 : vector<1x8x8xf32>
    %cst_35 = arith.constant dense<0xFF800000> : vector<1x8xf32>
    %82 = vector.multi_reduction <maximumf>, %81, %cst_35 [2] : vector<1x8x8xf32> to vector<1x8xf32>
    %83 = vector.shape_cast %82 : vector<1x8xf32> to vector<1x8x1xf32>
    %84 = vector.broadcast %83 : vector<1x8x1xf32> to vector<1x8x8xf32>
    %85 = arith.subf %81, %84 : vector<1x8x8xf32>
    %86 = math.exp %85 : vector<1x8x8xf32>
    %cst_36 = arith.constant dense<0.000000e+00> : vector<1x8xf32>
    %87 = vector.multi_reduction <add>, %86, %cst_36 [2] : vector<1x8x8xf32> to vector<1x8xf32>
    %88 = vector.shape_cast %87 : vector<1x8xf32> to vector<1x8x1xf32>
    %89 = tpu.reciprocal %88 {approx = true} : vector<1x8x1xf32> -> vector<1x8x1xf32>
    %90 = vector.broadcast %89 : vector<1x8x1xf32> to vector<1x8x8xf32>
    %91 = arith.mulf %86, %90 : vector<1x8x8xf32>
    %92 = arith.truncf %91 : vector<1x8x8xf32> to vector<1x8x8xbf16>
    "tpu.trace_start"() <{level = 10 : i32, message = "bqk,bkd->bqd"}> : () -> ()
    %cst_37 = arith.constant dense<0.000000e+00> : vector<1x8x8xf32>
    %93 = tpu.matmul %92, %78, %cst_37 {dimension_numbers = #tpu.dot_dimension_numbers<[2], [1], [1], [2], [0, 0, 0, 1, 1, 2], [0], [0]>} : vector<1x8x8xbf16>, vector<1x8x8xbf16>, vector<1x8x8xf32> -> vector<1x8x8xf32>
    "tpu.trace_stop"() : () -> ()
    %94 = vector.shape_cast %93 : vector<1x8x8xf32> to vector<8x8xf32>
    %95 = arith.truncf %94 : vector<8x8xf32> to vector<8x8xbf16>
    %c0_38 = arith.constant 0 : index
    %c8 = arith.constant 8 : index
    %c0_39 = arith.constant 0 : index
    %96 = vector.load %arg8[%c0_38, %c8, %c0_39] : memref<1x32x32xbf16, #tpu.memory_space<vmem>>, vector<1x8x32xbf16>
    %97 = vector.shape_cast %96 : vector<1x8x32xbf16> to vector<8x32xbf16>
    %cst_40 = arith.constant dense<0.000000e+00> : vector<8x32xf32>
    %98 = tpu.matmul %95, %97, %cst_40 {dimension_numbers = #tpu.dot_dimension_numbers<[1], [0], [0], [1], [0, 0, 1, 1], [], []>} : vector<8x8xbf16>, vector<8x32xbf16>, vector<8x32xf32> -> vector<8x32xf32>
    %99 = arith.addf %75, %98 : vector<8x32xf32>
    %100 = vector.extract_strided_slice %43 {offsets = [0, 0, 16], sizes = [1, 8, 8], strides = [1, 1, 1]} : vector<1x8x32xbf16> to vector<1x8x8xbf16>
    %101 = vector.extract_strided_slice %45 {offsets = [0, 0, 16], sizes = [1, 8, 8], strides = [1, 1, 1]} : vector<1x8x32xbf16> to vector<1x8x8xbf16>
    %102 = vector.extract_strided_slice %47 {offsets = [0, 0, 16], sizes = [1, 8, 8], strides = [1, 1, 1]} : vector<1x8x32xbf16> to vector<1x8x8xbf16>
    "tpu.trace_start"() <{level = 10 : i32, message = "bqd,bkd->bqk"}> : () -> ()
    %cst_41 = arith.constant dense<0.000000e+00> : vector<1x8x8xf32>
    %103 = tpu.matmul %100, %101, %cst_41 {dimension_numbers = #tpu.dot_dimension_numbers<[2], [2], [1], [1], [0, 0, 0, 1, 1, 1], [0], [0]>} : vector<1x8x8xbf16>, vector<1x8x8xbf16>, vector<1x8x8xf32> -> vector<1x8x8xf32>
    "tpu.trace_stop"() : () -> ()
    %104 = vector.broadcast %4 : vector<1x1x8xf32> to vector<1x8x8xf32>
    %105 = arith.addf %103, %104 : vector<1x8x8xf32>
    %cst_42 = arith.constant dense<0xFF800000> : vector<1x8xf32>
    %106 = vector.multi_reduction <maximumf>, %105, %cst_42 [2] : vector<1x8x8xf32> to vector<1x8xf32>
    %107 = vector.shape_cast %106 : vector<1x8xf32> to vector<1x8x1xf32>
    %108 = vector.broadcast %107 : vector<1x8x1xf32> to vector<1x8x8xf32>
    %109 = arith.subf %105, %108 : vector<1x8x8xf32>
    %110 = math.exp %109 : vector<1x8x8xf32>
    %cst_43 = arith.constant dense<0.000000e+00> : vector<1x8xf32>
    %111 = vector.multi_reduction <add>, %110, %cst_43 [2] : vector<1x8x8xf32> to vector<1x8xf32>
    %112 = vector.shape_cast %111 : vector<1x8xf32> to vector<1x8x1xf32>
    %113 = tpu.reciprocal %112 {approx = true} : vector<1x8x1xf32> -> vector<1x8x1xf32>
    %114 = vector.broadcast %113 : vector<1x8x1xf32> to vector<1x8x8xf32>
    %115 = arith.mulf %110, %114 : vector<1x8x8xf32>
    %116 = arith.truncf %115 : vector<1x8x8xf32> to vector<1x8x8xbf16>
    "tpu.trace_start"() <{level = 10 : i32, message = "bqk,bkd->bqd"}> : () -> ()
    %cst_44 = arith.constant dense<0.000000e+00> : vector<1x8x8xf32>
    %117 = tpu.matmul %116, %102, %cst_44 {dimension_numbers = #tpu.dot_dimension_numbers<[2], [1], [1], [2], [0, 0, 0, 1, 1, 2], [0], [0]>} : vector<1x8x8xbf16>, vector<1x8x8xbf16>, vector<1x8x8xf32> -> vector<1x8x8xf32>
    "tpu.trace_stop"() : () -> ()
    %118 = vector.shape_cast %117 : vector<1x8x8xf32> to vector<8x8xf32>
    %119 = arith.truncf %118 : vector<8x8xf32> to vector<8x8xbf16>
    %c0_45 = arith.constant 0 : index
    %c16 = arith.constant 16 : index
    %c0_46 = arith.constant 0 : index
    %120 = vector.load %arg8[%c0_45, %c16, %c0_46] : memref<1x32x32xbf16, #tpu.memory_space<vmem>>, vector<1x8x32xbf16>
    %121 = vector.shape_cast %120 : vector<1x8x32xbf16> to vector<8x32xbf16>
    %cst_47 = arith.constant dense<0.000000e+00> : vector<8x32xf32>
    %122 = tpu.matmul %119, %121, %cst_47 {dimension_numbers = #tpu.dot_dimension_numbers<[1], [0], [0], [1], [0, 0, 1, 1], [], []>} : vector<8x8xbf16>, vector<8x32xbf16>, vector<8x32xf32> -> vector<8x32xf32>
    %123 = arith.addf %99, %122 : vector<8x32xf32>
    %124 = vector.extract_strided_slice %43 {offsets = [0, 0, 24], sizes = [1, 8, 8], strides = [1, 1, 1]} : vector<1x8x32xbf16> to vector<1x8x8xbf16>
    %125 = vector.extract_strided_slice %45 {offsets = [0, 0, 24], sizes = [1, 8, 8], strides = [1, 1, 1]} : vector<1x8x32xbf16> to vector<1x8x8xbf16>
    %126 = vector.extract_strided_slice %47 {offsets = [0, 0, 24], sizes = [1, 8, 8], strides = [1, 1, 1]} : vector<1x8x32xbf16> to vector<1x8x8xbf16>
    "tpu.trace_start"() <{level = 10 : i32, message = "bqd,bkd->bqk"}> : () -> ()
    %cst_48 = arith.constant dense<0.000000e+00> : vector<1x8x8xf32>
    %127 = tpu.matmul %124, %125, %cst_48 {dimension_numbers = #tpu.dot_dimension_numbers<[2], [2], [1], [1], [0, 0, 0, 1, 1, 1], [0], [0]>} : vector<1x8x8xbf16>, vector<1x8x8xbf16>, vector<1x8x8xf32> -> vector<1x8x8xf32>
    "tpu.trace_stop"() : () -> ()
    %128 = vector.broadcast %4 : vector<1x1x8xf32> to vector<1x8x8xf32>
    %129 = arith.addf %127, %128 : vector<1x8x8xf32>
    %cst_49 = arith.constant dense<0xFF800000> : vector<1x8xf32>
    %130 = vector.multi_reduction <maximumf>, %129, %cst_49 [2] : vector<1x8x8xf32> to vector<1x8xf32>
    %131 = vector.shape_cast %130 : vector<1x8xf32> to vector<1x8x1xf32>
    %132 = vector.broadcast %131 : vector<1x8x1xf32> to vector<1x8x8xf32>
    %133 = arith.subf %129, %132 : vector<1x8x8xf32>
    %134 = math.exp %133 : vector<1x8x8xf32>
    %cst_50 = arith.constant dense<0.000000e+00> : vector<1x8xf32>
    %135 = vector.multi_reduction <add>, %134, %cst_50 [2] : vector<1x8x8xf32> to vector<1x8xf32>
    %136 = vector.shape_cast %135 : vector<1x8xf32> to vector<1x8x1xf32>
    %137 = tpu.reciprocal %136 {approx = true} : vector<1x8x1xf32> -> vector<1x8x1xf32>
    %138 = vector.broadcast %137 : vector<1x8x1xf32> to vector<1x8x8xf32>
    %139 = arith.mulf %134, %138 : vector<1x8x8xf32>
    %140 = arith.truncf %139 : vector<1x8x8xf32> to vector<1x8x8xbf16>
    "tpu.trace_start"() <{level = 10 : i32, message = "bqk,bkd->bqd"}> : () -> ()
    %cst_51 = arith.constant dense<0.000000e+00> : vector<1x8x8xf32>
    %141 = tpu.matmul %140, %126, %cst_51 {dimension_numbers = #tpu.dot_dimension_numbers<[2], [1], [1], [2], [0, 0, 0, 1, 1, 2], [0], [0]>} : vector<1x8x8xbf16>, vector<1x8x8xbf16>, vector<1x8x8xf32> -> vector<1x8x8xf32>
    "tpu.trace_stop"() : () -> ()
    %142 = vector.shape_cast %141 : vector<1x8x8xf32> to vector<8x8xf32>
    %143 = arith.truncf %142 : vector<8x8xf32> to vector<8x8xbf16>
    %c0_52 = arith.constant 0 : index
    %c24 = arith.constant 24 : index
    %c0_53 = arith.constant 0 : index
    %144 = vector.load %arg8[%c0_52, %c24, %c0_53] : memref<1x32x32xbf16, #tpu.memory_space<vmem>>, vector<1x8x32xbf16>
    %145 = vector.shape_cast %144 : vector<1x8x32xbf16> to vector<8x32xbf16>
    %cst_54 = arith.constant dense<0.000000e+00> : vector<8x32xf32>
    %146 = tpu.matmul %143, %145, %cst_54 {dimension_numbers = #tpu.dot_dimension_numbers<[1], [0], [0], [1], [0, 0, 1, 1], [], []>} : vector<8x8xbf16>, vector<8x32xbf16>, vector<8x32xf32> -> vector<8x32xf32>
    %147 = arith.addf %123, %146 : vector<8x32xf32>
    %148 = arith.addf %3, %147 : vector<8x32xf32>
    %c0_55 = arith.constant 0 : index
    %c0_56 = arith.constant 0 : index
    %c0_57 = arith.constant 0 : index
    %149 = vector.load %arg10[%c0_55, %c0_56, %c0_57] : memref<1x1x32xf32, #tpu.memory_space<vmem>>, vector<1x1x32xf32>
    %150 = vector.shape_cast %149 : vector<1x1x32xf32> to vector<1x32xf32>
    %c0_58 = arith.constant 0 : index
    %c0_59 = arith.constant 0 : index
    %c0_60 = arith.constant 0 : index
    %151 = vector.load %arg11[%c0_58, %c0_59, %c0_60] : memref<1x1x32xf32, #tpu.memory_space<vmem>>, vector<1x1x32xf32>
    %152 = vector.shape_cast %151 : vector<1x1x32xf32> to vector<1x32xf32>
    %cst_61 = arith.constant dense<0.000000e+00> : vector<8xf32>
    %153 = vector.multi_reduction <add>, %148, %cst_61 [1] : vector<8x32xf32> to vector<8xf32>
    %154 = vector.shape_cast %153 : vector<8xf32> to vector<8x1xf32>
    %cst_62 = arith.constant 3.200000e+01 : f32
    %155 = vector.broadcast %cst_62 : f32 to vector<8x1xf32>
    %156 = arith.divf %154, %155 : vector<8x1xf32>
    %157 = vector.broadcast %156 : vector<8x1xf32> to vector<8x32xf32>
    %158 = arith.subf %148, %157 : vector<8x32xf32>
    %159 = arith.mulf %158, %158 : vector<8x32xf32>
    %cst_63 = arith.constant dense<0.000000e+00> : vector<8xf32>
    %160 = vector.multi_reduction <add>, %159, %cst_63 [1] : vector<8x32xf32> to vector<8xf32>
    %161 = vector.shape_cast %160 : vector<8xf32> to vector<8x1xf32>
    %cst_64 = arith.constant 3.200000e+01 : f32
    %162 = vector.broadcast %cst_64 : f32 to vector<8x1xf32>
    %163 = arith.divf %161, %162 : vector<8x1xf32>
    %164 = vector.broadcast %156 : vector<8x1xf32> to vector<8x32xf32>
    %165 = arith.subf %148, %164 : vector<8x32xf32>
    %cst_65 = arith.constant 9.99999974E-6 : f32
    %166 = vector.broadcast %cst_65 : f32 to vector<8x1xf32>
    %167 = arith.addf %163, %166 : vector<8x1xf32>
    %168 = math.rsqrt %167 : vector<8x1xf32>
    %169 = vector.broadcast %168 : vector<8x1xf32> to vector<8x32xf32>
    %170 = arith.mulf %165, %169 : vector<8x32xf32>
    %171 = vector.broadcast %150 : vector<1x32xf32> to vector<8x32xf32>
    %172 = arith.mulf %170, %171 : vector<8x32xf32>
    %173 = vector.broadcast %152 : vector<1x32xf32> to vector<8x32xf32>
    %174 = arith.addf %172, %173 : vector<8x32xf32>
    %175 = arith.truncf %174 : vector<8x32xf32> to vector<8x32xbf16>
    %c0_66 = arith.constant 0 : index
    %c0_67 = arith.constant 0 : index
    %c0_68 = arith.constant 0 : index
    %176 = vector.load %arg12[%c0_66, %c0_67, %c0_68] : memref<1x32x128xbf16, #tpu.memory_space<vmem>>, vector<1x32x128xbf16>
    %177 = vector.shape_cast %176 : vector<1x32x128xbf16> to vector<32x128xbf16>
    %cst_69 = arith.constant dense<0.000000e+00> : vector<8x128xf32>
    %178 = tpu.matmul %175, %177, %cst_69 {dimension_numbers = #tpu.dot_dimension_numbers<[1], [0], [0], [1], [0, 0, 1, 1], [], []>} : vector<8x32xbf16>, vector<32x128xbf16>, vector<8x128xf32> -> vector<8x128xf32>
    %c0_70 = arith.constant 0 : index
    %c0_71 = arith.constant 0 : index
    %c0_72 = arith.constant 0 : index
    %179 = vector.load %arg13[%c0_70, %c0_71, %c0_72] : memref<1x1x128xf32, #tpu.memory_space<vmem>>, vector<1x1x128xf32>
    %180 = vector.shape_cast %179 : vector<1x1x128xf32> to vector<1x128xf32>
    %181 = vector.broadcast %180 : vector<1x128xf32> to vector<8x128xf32>
    %182 = arith.addf %178, %181 : vector<8x128xf32>
    %cst_73 = arith.constant 5.000000e-01 : f32
    %183 = vector.broadcast %cst_73 : f32 to vector<8x128xf32>
    %184 = arith.mulf %183, %182 : vector<8x128xf32>
    %cst_74 = arith.constant 4.471500e-02 : f32
    %185 = vector.broadcast %cst_74 : f32 to vector<8x128xf32>
    %186 = arith.mulf %185, %182 : vector<8x128xf32>
    %187 = arith.mulf %186, %182 : vector<8x128xf32>
    %188 = arith.mulf %187, %182 : vector<8x128xf32>
    %189 = arith.addf %182, %188 : vector<8x128xf32>
    %cst_75 = arith.constant 0.797884583 : f32
    %190 = vector.broadcast %cst_75 : f32 to vector<8x128xf32>
    %191 = arith.mulf %190, %189 : vector<8x128xf32>
    %192 = math.tanh %191 : vector<8x128xf32>
    %cst_76 = arith.constant 1.000000e+00 : f32
    %193 = vector.broadcast %cst_76 : f32 to vector<8x128xf32>
    %194 = arith.addf %193, %192 : vector<8x128xf32>
    %195 = arith.mulf %184, %194 : vector<8x128xf32>
    %196 = arith.truncf %195 : vector<8x128xf32> to vector<8x128xbf16>
    %c0_77 = arith.constant 0 : index
    %c0_78 = arith.constant 0 : index
    %c0_79 = arith.constant 0 : index
    %197 = vector.load %arg14[%c0_77, %c0_78, %c0_79] : memref<1x128x32xbf16, #tpu.memory_space<vmem>>, vector<1x128x32xbf16>
    %198 = vector.shape_cast %197 : vector<1x128x32xbf16> to vector<128x32xbf16>
    %cst_80 = arith.constant dense<0.000000e+00> : vector<8x32xf32>
    %199 = tpu.matmul %196, %198, %cst_80 {dimension_numbers = #tpu.dot_dimension_numbers<[1], [0], [0], [1], [0, 0, 1, 1], [], []>} : vector<8x128xbf16>, vector<128x32xbf16>, vector<8x32xf32> -> vector<8x32xf32>
    %c0_81 = arith.constant 0 : index
    %c0_82 = arith.constant 0 : index
    %c0_83 = arith.constant 0 : index
    %200 = vector.load %arg15[%c0_81, %c0_82, %c0_83] : memref<1x1x32xf32, #tpu.memory_space<vmem>>, vector<1x1x32xf32>
    %201 = vector.shape_cast %200 : vector<1x1x32xf32> to vector<1x32xf32>
    %202 = vector.broadcast %201 : vector<1x32xf32> to vector<8x32xf32>
    %203 = arith.addf %199, %202 : vector<8x32xf32>
    %204 = arith.addf %148, %203 : vector<8x32xf32>
    %c0_84 = arith.constant 0 : index
    %c0_85 = arith.constant 0 : index
    %205 = vector.load %arg19[%c0_84, %c0_85] : memref<8x32xf32, #tpu.memory_space<vmem>>, vector<8x32xf32>
    tpu.vector_store %arg19[%c0_84, %c0_85], %204 {strides = array<i32>} : memref<8x32xf32, #tpu.memory_space<vmem>>, vector<8x32xf32>,
    %c1_i32 = arith.constant 1 : i32
    %206 = arith.cmpi eq, %arg1, %c1_i32 : i32
    %207 = arith.extui %206 : i1 to i32
    %c0_i32_86 = arith.constant 0 : i32
    %208 = arith.cmpi ne, %207, %c0_i32_86 : i32
    scf.if %208 {
      %c0_87 = arith.constant 0 : index
      %c0_88 = arith.constant 0 : index
      %209 = vector.load %arg16[%c0_87, %c0_88] : memref<1x32xf32, #tpu.memory_space<vmem>>, vector<1x32xf32>
      %c0_89 = arith.constant 0 : index
      %c0_90 = arith.constant 0 : index
      %210 = vector.load %arg17[%c0_89, %c0_90] : memref<1x32xf32, #tpu.memory_space<vmem>>, vector<1x32xf32>
      %cst_91 = arith.constant dense<0.000000e+00> : vector<8xf32>
      %211 = vector.multi_reduction <add>, %204, %cst_91 [1] : vector<8x32xf32> to vector<8xf32>
      %212 = vector.shape_cast %211 : vector<8xf32> to vector<8x1xf32>
      %cst_92 = arith.constant 3.200000e+01 : f32
      %213 = vector.broadcast %cst_92 : f32 to vector<8x1xf32>
      %214 = arith.divf %212, %213 : vector<8x1xf32>
      %215 = vector.broadcast %214 : vector<8x1xf32> to vector<8x32xf32>
      %216 = arith.subf %204, %215 : vector<8x32xf32>
      %217 = arith.mulf %216, %216 : vector<8x32xf32>
      %cst_93 = arith.constant dense<0.000000e+00> : vector<8xf32>
      %218 = vector.multi_reduction <add>, %217, %cst_93 [1] : vector<8x32xf32> to vector<8xf32>
      %219 = vector.shape_cast %218 : vector<8xf32> to vector<8x1xf32>
      %cst_94 = arith.constant 3.200000e+01 : f32
      %220 = vector.broadcast %cst_94 : f32 to vector<8x1xf32>
      %221 = arith.divf %219, %220 : vector<8x1xf32>
      %222 = vector.broadcast %214 : vector<8x1xf32> to vector<8x32xf32>
      %223 = arith.subf %204, %222 : vector<8x32xf32>
      %cst_95 = arith.constant 9.99999974E-6 : f32
      %224 = vector.broadcast %cst_95 : f32 to vector<8x1xf32>
      %225 = arith.addf %221, %224 : vector<8x1xf32>
      %226 = math.rsqrt %225 : vector<8x1xf32>
      %227 = vector.broadcast %226 : vector<8x1xf32> to vector<8x32xf32>
      %228 = arith.mulf %223, %227 : vector<8x32xf32>
      %229 = vector.broadcast %209 : vector<1x32xf32> to vector<8x32xf32>
      %230 = arith.mulf %228, %229 : vector<8x32xf32>
      %231 = vector.broadcast %210 : vector<1x32xf32> to vector<8x32xf32>
      %232 = arith.addf %230, %231 : vector<8x32xf32>
      %233 = vector.shape_cast %232 : vector<8x32xf32> to vector<1x8x32xf32>
      %c0_96 = arith.constant 0 : index
      %c0_97 = arith.constant 0 : index
      %c0_98 = arith.constant 0 : index
      %234 = vector.load %arg18[%c0_96, %c0_97, %c0_98] : memref<1x8x32xf32, #tpu.memory_space<vmem>>, vector<1x8x32xf32>
      tpu.vector_store %arg18[%c0_96, %c0_97, %c0_98], %233 {strides = array<i32>} : memref<1x8x32xf32, #tpu.memory_space<vmem>>, vector<1x8x32xf32>,
    } else {
    }
    return
  }
  func.func @transform_0(%arg0: i32, %arg1: i32) -> (i32, i32, i32) {
    %c0_i32 = arith.constant 0 : i32
    %c0_i32_0 = arith.constant 0 : i32
    %c0_i32_1 = arith.constant 0 : i32
    return %arg0, %c0_i32, %c0_i32_0 : i32, i32, i32
  }
  func.func @transform_1(%arg0: i32, %arg1: i32) -> (i32, i32, i32) {
    %c0_i32 = arith.constant 0 : i32
    %c0_i32_0 = arith.constant 0 : i32
    %c0_i32_1 = arith.constant 0 : i32
    return %arg0, %c0_i32, %c0_i32_0 : i32, i32, i32
  }
  func.func @transform_2(%arg0: i32, %arg1: i32) -> (i32, i32, i32) {
    %c0_i32 = arith.constant 0 : i32
    %c0_i32_0 = arith.constant 0 : i32
    %c0_i32_1 = arith.constant 0 : i32
    return %arg1, %c0_i32, %c0_i32_0 : i32, i32, i32
  }
  func.func @transform_3(%arg0: i32, %arg1: i32) -> (i32, i32, i32) {
    %c0_i32 = arith.constant 0 : i32
    %c0_i32_0 = arith.constant 0 : i32
    %c0_i32_1 = arith.constant 0 : i32
    return %arg1, %c0_i32, %c0_i32_0 : i32, i32, i32
  }
  func.func @transform_4(%arg0: i32, %arg1: i32) -> (i32, i32, i32) {
    %c0_i32 = arith.constant 0 : i32
    %c0_i32_0 = arith.constant 0 : i32
    %c0_i32_1 = arith.constant 0 : i32
    return %arg1, %c0_i32, %c0_i32_0 : i32, i32, i32
  }
  func.func @transform_5(%arg0: i32, %arg1: i32) -> (i32, i32, i32) {
    %c0_i32 = arith.constant 0 : i32
    %c0_i32_0 = arith.constant 0 : i32
    %c0_i32_1 = arith.constant 0 : i32
    return %arg1, %c0_i32, %c0_i32_0 : i32, i32, i32
  }
  func.func @transform_6(%arg0: i32, %arg1: i32) -> (i32, i32, i32) {
    %c0_i32 = arith.constant 0 : i32
    %c0_i32_0 = arith.constant 0 : i32
    %c0_i32_1 = arith.constant 0 : i32
    return %arg1, %c0_i32, %c0_i32_0 : i32, i32, i32
  }
  func.func @transform_7(%arg0: i32, %arg1: i32) -> (i32, i32, i32) {
    %c0_i32 = arith.constant 0 : i32
    %c0_i32_0 = arith.constant 0 : i32
    %c0_i32_1 = arith.constant 0 : i32
    return %arg1, %c0_i32, %c0_i32_0 : i32, i32, i32
  }
  func.func @transform_8(%arg0: i32, %arg1: i32) -> (i32, i32, i32) {
    %c0_i32 = arith.constant 0 : i32
    %c0_i32_0 = arith.constant 0 : i32
    %c0_i32_1 = arith.constant 0 : i32
    return %arg1, %c0_i32, %c0_i32_0 : i32, i32, i32
  }
  func.func @transform_9(%arg0: i32, %arg1: i32) -> (i32, i32, i32) {
    %c0_i32 = arith.constant 0 : i32
    %c0_i32_0 = arith.constant 0 : i32
    %c0_i32_1 = arith.constant 0 : i32
    return %arg1, %c0_i32, %c0_i32_0 : i32, i32, i32
  }
  func.func @transform_10(%arg0: i32, %arg1: i32) -> (i32, i32, i32) {
    %c0_i32 = arith.constant 0 : i32
    %c0_i32_0 = arith.constant 0 : i32
    %c0_i32_1 = arith.constant 0 : i32
    return %arg1, %c0_i32, %c0_i32_0 : i32, i32, i32
  }
  func.func @transform_11(%arg0: i32, %arg1: i32) -> (i32, i32, i32) {
    %c0_i32 = arith.constant 0 : i32
    %c0_i32_0 = arith.constant 0 : i32
    %c0_i32_1 = arith.constant 0 : i32
    return %arg1, %c0_i32, %c0_i32_0 : i32, i32, i32
  }
  func.func @transform_12(%arg0: i32, %arg1: i32) -> (i32, i32, i32) {
    %c0_i32 = arith.constant 0 : i32
    %c0_i32_0 = arith.constant 0 : i32
    %c0_i32_1 = arith.constant 0 : i32
    return %arg1, %c0_i32, %c0_i32_0 : i32, i32, i32
  }
  func.func @transform_13(%arg0: i32, %arg1: i32) -> (i32, i32, i32) {
    %c0_i32 = arith.constant 0 : i32
    %c0_i32_0 = arith.constant 0 : i32
    %c0_i32_1 = arith.constant 0 : i32
    return %arg1, %c0_i32, %c0_i32_0 : i32, i32, i32
  }
  func.func @transform_14(%arg0: i32, %arg1: i32) -> (i32, i32) {
    %c0_i32 = arith.constant 0 : i32
    %c0_i32_0 = arith.constant 0 : i32
    %c0_i32_1 = arith.constant 0 : i32
    return %c0_i32, %c0_i32_0 : i32, i32
  }
  func.func @transform_15(%arg0: i32, %arg1: i32) -> (i32, i32) {
    %c0_i32 = arith.constant 0 : i32
    %c0_i32_0 = arith.constant 0 : i32
    %c0_i32_1 = arith.constant 0 : i32
    return %c0_i32, %c0_i32_0 : i32, i32
  }
  func.func @transform_16(%arg0: i32, %arg1: i32) -> (i32, i32, i32) {
    %c0_i32 = arith.constant 0 : i32
    %c0_i32_0 = arith.constant 0 : i32
    %c0_i32_1 = arith.constant 0 : i32
    return %arg0, %c0_i32, %c0_i32_0 : i32, i32, i32
  }
}

</mosaic_0001>

<bundles_post_ra>
// kernel: tpu_custom_call.1
= control target key start
LH: loop header
LB: loop body
LE: loop exit
PB: predicated region body
PF: predicated region fallthrough
CT: control target
= control target key end

     0   :  { %s2878_s0 = inlined_call_operand.vmem [shape: f32[2,8,32], index: 0, kind: input, shape index: {}]   ;;  %s2879_s1 = inlined_call_operand.vmem [shape: f32[2,1,8], index: 1, kind: input, shape index: {}]   ;;  %s2880_s2 = inlined_call_operand.vmem [shape: f32[2,1,32], index: 2, kind: input, shape index: {}]   ;;  %s2881_s3 = inlined_call_operand.vmem [shape: f32[2,1,32], index: 3, kind: input, shape index: {}]   ;;  %s2882_s4 = inlined_call_operand.vmem [shape: bf16[2,32,96], index: 4, kind: input, shape index: {}]   ;;  %s2883_s5 = inlined_call_operand.vmem [shape: f32[2,1,96], index: 5, kind: input, shape index: {}]   ;;  %s2884_s6 = inlined_call_operand.vmem [shape: bf16[2,32,32], index: 6, kind: input, shape index: {}]   ;;  %s2885_s7 = inlined_call_operand.vmem [shape: f32[2,1,32], index: 7, kind: input, shape index: {}]   ;;  %s2886_s8 = inlined_call_operand.vmem [shape: f32[2,1,32], index: 8, kind: input, shape index: {}]   ;;  %s2887_s9 = inlined_call_operand.vmem [shape: f32[2,1,32], index: 9, kind: input, shape index: {}]   ;;  %s2888_s10 = inlined_call_operand.vmem [shape: bf16[2,32,128], index: 10, kind: input, shape index: {}]   ;;  %s2889_s11 = inlined_call_operand.vmem [shape: f32[2,1,128], index: 11, kind: input, shape index: {}]   ;;  %s2890_s12 = inlined_call_operand.vmem [shape: bf16[2,128,32], index: 12, kind: input, shape index: {}]   ;;  %s2891_s13 = inlined_call_operand.vmem [shape: f32[2,1,32], index: 13, kind: input, shape index: {}]   ;;  %s2892_s14 = inlined_call_operand.vmem [shape: f32[1,32], index: 14, kind: input, shape index: {}]   ;;  %s2893_s15 = inlined_call_operand.vmem [shape: f32[1,32], index: 15, kind: input, shape index: {}]   ;;  %s2894_s16 = inlined_call_operand.hbm [shape: f32[2,8,32], index: 16, kind: output, shape index: {}]  }
   0x1   :  { %2911 = sst [smem:[#allocation20_spill]] %s2878_s0 }
   0x2   :  { %2912 = sst [smem:[#allocation21_spill]] %s2882_s4 }
   0x3   :  { %2913 = sst [smem:[#allocation22_spill]] %s2884_s6 }
   0x4   :  { %2914 = sst [smem:[#allocation23_spill]] %s2885_s7 }
   0x5   :  { %2915 = sst [smem:[#allocation24_spill]] %s2886_s8 }
   0x6   :  { %2916 = sst [smem:[#allocation25_spill]] %s2889_s11 }
   0x7   :  { %2917 = sst [smem:[#allocation26_spill]] %s2890_s12 }
   0x8   :  { %2918 = sst [smem:[#allocation27_spill]] %s2891_s13 }
   0x9   :  { %2919 = sst [smem:[#allocation28_spill]] %s2892_s14 }
   0xa   :  { %2920 = sst [smem:[#allocation29_spill]] %s2893_s15 }
   0xb   :  { %2921 = sst [smem:[#allocation30_spill]] %s2894_s16 }
   0xc   :  { %21 = vsyncpa [#allocation4], 0 }
   0xd   :  { %23 = vsyncpa [#allocation4 + $0x1], 0  ;;  %s2486_s21 = smov 0   ;;  %s2488_s22 = smov 0  }
   0xe   :  { %s2490_s23 = smov 0   ;;  %s2492_s24 = smov 0  }
   0xf   :  { %s2494_s25 = smov 0   ;;  %s2496_s26 = smov 0  }
  0x10   :  { %s2498_s27 = smov 0   ;;  %s2500_s28 = smov 0  }
  0x11 LB: > { %2922 = sst [smem:[#allocation6_spill]] %s2357_s21  ;;  %s1964_s29 = sadd.s32 4294967295, %s2385_s28   ;;  %s2385_s28 = sphi %s2500_s28, %s29_s28   ;;  %s2381_s27 = sphi %s2498_s27, %s2976_s27   ;;  %s2377_s26 = sphi %s2496_s26, %s2975_s26   ;;  %s2373_s25 = sphi %s2494_s25, %s2974_s25   ;;  %s2369_s24 = sphi %s2492_s24, %s2973_s24   ;;  %s2365_s23 = sphi %s2490_s23, %s2972_s23   ;;  %s2361_s22 = sphi %s2488_s22, %s2971_s22   ;;  %s2357_s21 = sphi %s2486_s21, %s2970_s21  }
  0x12   : > { %2923 = sst [smem:[#allocation7_spill]] %s2361_s22  ;;  %s1965_s30 = sadd.s32 4294967294, %s2385_s28  }
  0x13   : > { %2924 = sst [smem:[#allocation8_spill]] %s2365_s23  ;;  %s38_s0 = sadd.s32 1, %s2377_s26 }
  0x14   : > { %2925 = sst [smem:[#allocation9_spill]] %s2369_s24  ;;  %p39_p0 = scmp.ge.s32.totalorder %s38_s0, 2 }
  0x15   : > { %2926 = sst [smem:[#allocation10_spill]] %s2373_s25  ;;  %s41_s17 = sadd.s32 1, %s2381_s27 }
  0x16   : > { %2927 = sst [smem:[#allocation11_spill]] %s2377_s26  ;;  %p464_p1 = scmp.ne.s32.totalorder %s2365_s23, %s2361_s22 }
  0x17   : > { %2928 = sst [smem:[#allocation12_spill]] %s2381_s27  ;;  %p465_p2 = scmp.eq.s32.totalorder %s1964_s29, 3 }
  0x18   : > { %2929 = sst [smem:[#allocation13_spill]] %s2385_s28  ;;  %s2978_s0 = smov (%p39_p0, %s38_s0), 0 }
  0x19   : > { %2930 = sst [smem:[#allocation14_spill]] %s2978_s0  ;;  %s2980_s17 = smov (!%p39_p0, %s41_s17), %s2381_s27 }
  0x1a   : > { %p2535_p3 = por %p465_p2, %p464_p1  ;;  %p470_p4 = scmp.ne.s32.totalorder %s2361_s22, %s2357_s21 }
  0x1b   : > { %p43_p5 = scmp.ge.s32.totalorder %s2980_s17, 2  ;;  %p471_p6 = scmp.eq.s32.totalorder %s1965_s30, 3 }
  0x1c   : > { %s2931_s18 = scalar_select %p2535_p3, 1, 0 }
  0x1d   : > { %p1968_p7 = scmp.ge.s32.totalorder %s2385_s28, 1  ;;  %p588_p8 = scmp.lt.s32.totalorder %s2385_s28, 5 }
  0x1e   : > { %2932 = sst [smem:[#allocation15_spill]] %s2931_s18  ;;  %s2982_s17 = smov (%p43_p5, %s2980_s17), 0 }
  0x1f   : > { %2933 = sst [smem:[#allocation16_spill]] %s2982_s17  ;;  %p2545_p9 = por %p471_p6, %p470_p4 }
  0x20   : > { %p589_p10 = pnand %p1968_p7, %p588_p8  ;;  %s451_s20 = ssub.s32 %s2381_s27, %s2982_s17 }
  0x21   : > { %s2934_s19 = scalar_select %p2545_p9, 1, 0 }
  0x22   : > { %s454_s29 = sadd.s32 1, %s2365_s23  ;;  %p452_p11 = scmp.eq.s32.totalorder %s451_s20, 0 }
  0x23   : > { %2935 = sst [smem:[#allocation17_spill]] %s2934_s19  ;;  %592 = sbr.rel (%p589_p10) target bundleno = 3908 (0xf44), region = 84 }
  0x24   : > { %s2553_s0 = scalar_select %p452_p11, %s2365_s23, %s454_s29  }
  0x26   : > { %2936 = sst [smem:[#allocation18_spill]] %s2553_s0 }
  0x28   : > { %s2897_s30 = sand.u32 1, %s2361_s22   ;;  %p684_p12 = scmp.lt.s32.totalorder %s2373_s25, 1 }
  0x29   : > { %s2559_s26 = sshll.u32 %s2897_s30, 3  ;;  %p691_p13 = scmp.lt.s32.totalorder %s2369_s24, 1 }
  0x2a   : > { %s2563_s19 = scalar_select %p684_p12, %s2373_s25, 1 }
  0x2b   : > { %s2566_s20 = scalar_select %p691_p13, %s2369_s24, 1 }
  0x2c   : > { %s1970_s29 = sshll.u32 %s2563_s19, 3  ;;  %s2937_s21 = sld [smem:[#allocation20_spill]] }
  0x2d   : > { %s2022_s24 = sshll.u32 %s2566_s20, 4  ;;  %s2938_s4 = sld [smem:[#allocation21_spill]] }
  0x2e   : > { %s2939_s6 = sld [smem:[#allocation22_spill]]  ;;  %s718_s22 = scalar_lea.vmem %s2887_s9, %s2566_s20 }
  0x2f   : > { %s2614_s30 = scalar_lea.vmem %s2888_s10, %s2022_s24  ;;  %s2943_s23 = sld [smem:[#allocation25_spill]] }
  0x30   : > { %s2944_s15 = sld [smem:[#allocation27_spill]]  ;;  %s683_s12 = scalar_lea.vmem [#allocation3], %s2559_s26 }
  0x31   : > { %s2945_s14 = sld [smem:[#allocation26_spill]] }
  0x32   : > { %s687_s28 = scalar_lea.vmem %s2937_s21, %s1970_s29  ;;  %s2946_s13 = sld [smem:[#allocation9_spill]] }
  0x33   : > { %s2588_s11 = scalar_lea.vmem %s2938_s4, %s2022_s24 }
  0x34   : > { %s2597_s29 = scalar_lea.vmem %s2939_s6, %s2022_s24 }
  0x35   : > { %2940 = sst [smem:[#allocation19_spill]] %s2597_s29  ;;  %s726_s6 = scalar_lea.vmem %s2943_s23, %s2566_s20 }
  0x36   : > { %s2025_s29 = sshll.u32 %s2566_s20, 6  ;;  %s734_s7 = scalar_lea.vmem %s2944_s15, %s2566_s20 }
  0x37   : > { %s2628_s8 = scalar_lea.vmem %s2945_s14, %s2025_s29 }
  0x38   : > { %p1979_p0 = scmp.ne.s32.totalorder %s2946_s13, 0 }
  0x3a   : > { %739 = sbr.rel (%p1979_p0) target bundleno = 65 (0x41), region = 88 }
  0x3f   : > { %v740_v0 = vld [vmem:[%s687_s28] sm:$0xff]  ;;  %vm741_vm0 = vcmask 261120  }
  0x40   : > { %742 = vst.msk [vmem:[#allocation2] sm:$0xff] %vm741_vm0, %v740_v0 }
  0x41 PF: > { %vm747_vm1 = vcmask 261120   ;;  %v2257_v8 = vld [vmem:[%s2588_s11 + $0x8] sm:$0xff]   ;;  %v2387_v9 = vmov 0.0   ;;  %vm2388_vm2 = vmmov 0   ;;  %v2258_v10 = vld [vmem:[%s2588_s11] sm:$0xff]   ;;  %s2947_s11 = scalar_lea.vmem %s2880_s2, %s2566_s20  ;;  %s2948_s23 = scalar_lea.vmem %s2881_s3, %s2566_s20  ;;  %vm862_vm3 = vcmask 64512  }
  0x42   : > { %2065 = vmatprep.subr.bf16.mxu1 %v2387_v9  ;;  %2069 = vmatprep.mubr.msk.bf16.mxu1 %vm2388_vm2, %v2387_v9  ;;  %v1980_v15 = vld [vmem:[%s2947_s11] ss:$0 sm:$0xff]  ;;  %s2949_s17 = scalar_lea.vmem %s2883_s5, %s2566_s20  ;;  %s2389_s0 = smov 96   ;;  %vm926_vm4 = vcmask 1043456  }
  0x43   : > { %2066 = vmatpush3.bf16.msra.mxu1 %v2257_v8  ;;  %2091 = vmatprep.subr.bf16.mxu0 %v2387_v9  ;;  %v1981_v17 = vld [vmem:[%s2948_s23] ss:$0 sm:$0xff]  ;;  %s2390_s21 = smov 120   ;;  %s2391_s16 = smov 88  }
  0x44   : > { %2067 = vmatprep.subr.bf16.mxu1 %v2387_v9  ;;  %2093 = vmatprep.mubr.msk.bf16.mxu0 %vm2388_vm2, %v2387_v9  ;;  %v1982_v21 = vld [vmem:[%s2949_s17] ss:$0 sm:$0xff]  ;;  %s2950_s25 = scalar_lea.vmem %s2879_s1, %s2563_s19  ;;  %s2392_s13 = smov 64  }
  0x45   : > { %v2689_v35 = vld [vmem:[%s2950_s25] ss:$0 sm:$0xff]  ;;  %s2393_s19 = smov 56   ;;  %s2394_s4 = smov 80  }
  0x46   : > { %s2395_s14 = smov 112   ;;  %s2951_s11 = sld [smem:[#allocation19_spill]] }
  0x47   : > { %v2632_v1 = vld [vmem:[#allocation2] sm:$0xff]  ;;  %2068 = vmatpush3.bf16.msra.mxu1 %v2258_v10  ;;  %s2396_s24 = smov 48   ;;  %s2397_s28 = smov 72  }
  0x48   : > { %v748_v2 = vsel %vm747_vm1, %v2632_v1, 0.0  ;;  %2073 = vmatprep.subr.bf16.mxu1 %v2387_v9  ;;  %s2398_s23 = smov 104   ;;  %s2952_s17 = sld [smem:[#allocation23_spill]] }
  0x49   : > { %749 = vadd.xlane.f32.xlu0 %v748_v2  ;;  %s2954_s27 = sld [smem:[#allocation24_spill]] }
  0x4c   : > { %v971_v0 = vld [vmem:[%s2951_s11] sm:$0xf] }
  0x4d   : > { %v976_v2 = vsel %vm926_vm4, %v971_v0, 0 }
  0x4f   : > { %s2955_s25 = scalar_lea.vmem %s2954_s27, %s2566_s20 }
  0xd2   : > { %v750_v3 = vpop.xlane.xlu0 %749 }
  0xd3   : > { %v752_v4 = vmul.f32 0.03125, %v750_v3 }
  0xd5   : > { %v753_v5 = vsub.f32 %v2632_v1, %v752_v4 }
  0xd7   : > { %v754_v6 = vmul.f32 %v753_v5, %v753_v5 }
  0xd9   : > { %v755_v7 = vsel %vm747_vm1, %v754_v6, 0.0 }
  0xda   : > { %756 = vadd.xlane.f32.xlu0 %v755_v7 }
 0x163   : > { %v757_v11 = vpop.xlane.xlu0 %756 }
 0x164   : > { %v758_v12 = vmul.f32 0.03125, %v757_v11 }
 0x166   : > { %v759_v13 = vadd.f32 1e-05, %v758_v12 }
 0x168   : > { %2269 = vrsqrt.f32 %v759_v13 }
 0x175   : > { %v2270_v14 = vpop.eup %2269 }
 0x176   : > { %v761_v16 = vmul.f32 %v2270_v14, %v753_v5 }
 0x178   : > { %v768_v18 = vmul.f32 %v1980_v15, %v761_v16 }
 0x17a   : > { %v775_v19 = vadd.f32 %v1981_v17, %v768_v18  ;;  %v1131_v18 = vld [vmem:[%s2951_s11 + $0x4] sm:$0xf] }
 0x17c   : > { %v776_v20 = vpack.c.bf16 %v775_v19, %v775_v19  ;;  %v1136_v19 = vsel %vm926_vm4, %v1131_v18, 0  ;;  %v1449_v18 = vld [vmem:[%s2951_s11 + $0xc] sm:$0xf] }
 0x17e   : > { %2070 = vmatmul.mubr.msk.bf16.vlgmr.msra.gmra.mxu1 %vm747_vm1, %v776_v20 }
 0x17f   : > { %2075 = vmatprep.mubr.msk.bf16.mxu1 %vm2388_vm2, %v2387_v9 }
 0x23e   : > { %v837_v22 = vpop.f32.mrf.mxu1 }
 0x23f   : > { %v838_v23 = vadd.f32 %v1982_v21, %v837_v22 }
 0x240   : > { %v2071_v24 = vpop.f32.mrf.mxu1 }
 0x241   : > { %v843_v25 = vmul.f32 0.35355338, %v838_v23  ;;  %v2666_v26 = vpack.c.bf16 %v838_v23, %v838_v23 }
 0x242   : > { %v840_v27 = vpop.f32.mrf.mxu1 }
 0x243   : > { %v2668_v28 = vpack.c.bf16 %v843_v25, %v843_v25  ;;  %860 = vrot.lane.b32.xlu1 %v2666_v26, %s2389_s0  ;;  %s2953_s0 = scalar_lea.vmem %s2952_s17, %s2566_s20 }
 0x244   : > { %v2072_v29 = vpop.f32.mrf.mxu1 }
 0x245   : > { %1020 = vrot.lane.b32.xlu0 %v2668_v28, %s2390_s21  ;;  %s2399_s21 = smov 40  }
 0x247   : > { %1022 = vrot.lane.b32.xlu1 %v2666_v26, %s2391_s16 }
 0x2b5   : > { %v861_v30 = vpop.permute.xlu1 %860 }
 0x2b6   : > { %v867_v31 = vsel %vm862_vm3, %v861_v30, 0 }
 0x2b7   : > { %2074 = vmatpush3.bf16.xpose.msra.mxu1 %v867_v31  ;;  %v1021_v34 = vpop.permute.xlu0 %1020 }
 0x2b8   : > { %2079 = vmatprep.subr.bf16.mxu1 %v2387_v9 }
 0x2b9   : > { %v1023_v32 = vpop.permute.xlu1 %1022 }
 0x2ba   : > { %v1028_v33 = vsel %vm862_vm3, %v1023_v32, 0 }
 0x2bb   : > { %2092 = vmatpush3.bf16.xpose.msra.mxu0 %v1028_v33 }
 0x2bc   : > { %2103 = vmatprep.subr.bf16.mxu0 %v2387_v9 }
 0x2be   : > { %2076 = vmatmul.mubr.msk.bf16.vlgmr.msra.gmra.mxu1 %vm862_vm3, %v2668_v28 }
 0x2bf   : > { %2081 = vmatprep.mubr.msk.bf16.mxu1 %vm2388_vm2, %v2387_v9 }
 0x2c2   : > { %2094 = vmatmul.mubr.msk.bf16.vlgmr.msra.gmra.mxu0 %vm862_vm3, %v1021_v34 }
 0x2c3   : > { %2105 = vmatprep.mubr.msk.bf16.mxu0 %vm2388_vm2, %v2387_v9  ;;  %2104 = vmatpush3.bf16.msra.mxu0 %v1136_v19 }
 0x2c4   : > { %2115 = vmatprep.subr.bf16.mxu0 %v2387_v9 }
 0x37e   : > { %v903_v36 = vpop.f32.mrf.mxu1 }
 0x37f   : > { %v904_v37 = vadd.f32 %v2689_v35, %v903_v36 }
 0x380   : > { %v2077_v38 = vpop.f32.mrf.mxu1 }
 0x381   : > { %v909_v39 = vsel %vm862_vm3, %v904_v37, -inf }
 0x382   : > { %v1064_v40 = vpop.f32.mrf.mxu0  ;;  %910 = vmax.xlane.f32.xlu1 %v909_v39  ;;  %v906_v41 = vpop.f32.mrf.mxu1 }
 0x383   : > { %v1065_v52 = vadd.f32 %v2689_v35, %v1064_v40 }
 0x384   : > { %v2078_v42 = vpop.f32.mrf.mxu1  ;;  %v2095_v43 = vpop.f32.mrf.mxu0 }
 0x385   : > { %v1070_v54 = vsel %vm862_vm3, %v1065_v52, -inf }
 0x386   : > { %v1067_v44 = vpop.f32.mrf.mxu0 }
 0x388   : > { %v2096_v45 = vpop.f32.mrf.mxu0 }
 0x389   : > { %v1986_v45 = vld [vmem:[%s2953_s0] ss:$0 sm:$0xff] }
 0x393   : > { %921 = vrot.lane.b32.xlu1 %v2666_v26, %s2392_s13 }
 0x40b   : > { %v911_v46 = vpop.xlane.xlu1 %910 }
 0x40c   : > { %v912_v47 = vsub.f32 %v904_v37, %v911_v46 }
 0x40e   : > { %v913_v48 = vmul.f32 1.442695, %v912_v47 }
 0x40f   : > { %v922_v49 = vpop.permute.xlu1 %921 }
 0x410   : > { %2271 = vpow2.f32 %v913_v48  ;;  %v928_v50 = vsel %vm926_vm4, %v922_v49, 0 }
 0x411   : > { %2080 = vmatpush3.bf16.msra.mxu1 %v928_v50 }
 0x412   : > { %2085 = vmatprep.subr.bf16.mxu1 %v2387_v9 }
 0x41d   : > { %v2272_v51 = vpop.eup %2271 }
 0x41e   : > { %v915_v53 = vsel %vm862_vm3, %v2272_v51, 0.0 }
 0x41f   : > { %916 = vadd.xlane.f32.xlu0 %v915_v53 }
 0x423   : > { %1071 = vmax.xlane.f32.xlu0 %v1070_v54 }
 0x439   : > { %1082 = vrot.lane.b32.xlu0 %v2666_v26, %s2393_s19 }
 0x43d   : > { %1181 = vrot.lane.b32.xlu0 %v2666_v26, %s2394_s4 }
 0x441   : > { %1179 = vrot.lane.b32.xlu0 %v2668_v28, %s2395_s14 }
 0x4a8   : > { %v917_v55 = vpop.xlane.xlu0 %916 }
 0x4a9   : > { %2273 = vrcp.f32 %v917_v55 }
 0x4ac   : > { %v1072_v56 = vpop.xlane.xlu0 %1071 }
 0x4ad   : > { %v1073_v57 = vsub.f32 %v1065_v52, %v1072_v56 }
 0x4af   : > { %v1074_v58 = vmul.f32 1.442695, %v1073_v57 }
 0x4b0   : > { %v1083_v4 = vpop.permute.xlu0 %1082 }
 0x4b1   : > { %2275 = vpow2.f32 %v1074_v58  ;;  %v1088_v10 = vsel %vm926_vm4, %v1083_v4, 0  ;;  %v1290_v58 = vld [vmem:[%s2951_s11 + $0x8] sm:$0xf]  ;;  %s2958_s11 = sld [smem:[#allocation9_spill]] }
 0x4b4   : > { %v1182_v14 = vpop.permute.xlu0 %1181 }
 0x4b5   : > { %v1187_v16 = vsel %vm862_vm3, %v1182_v14, 0 }
 0x4b6   : > { %v2274_v59 = vpop.eup %2273 }
 0x4b7   : > { %v919_v60 = vmul.f32 %v2274_v59, %v2272_v51  ;;  %v1295_v59 = vsel %vm926_vm4, %v1290_v58, 0  ;;  %v2264_v58 = vld [vmem:[%s2628_s8 + $0x20] sm:$0xff]   ;;  %p2015_p1 = scmp.ne.s32.totalorder %s2958_s11, 1 }
 0x4b8   : > { %v1180_v17 = vpop.permute.xlu0 %1179  ;;  %s2960_s29 = sld [smem:[#allocation29_spill]] (!%p2015_p1) }
 0x4b9   : > { %v920_v61 = vpack.c.bf16 %v919_v60, %v919_v60 }
 0x4bb   : > { %2082 = vmatmul.mubr.msk.bf16.vlgmr.msra.gmra.mxu1 %vm862_vm3, %v920_v61 }
 0x4bc   : > { %2087 = vmatprep.mubr.msk.bf16.mxu1 %vm2388_vm2, %v2387_v9  ;;  %2086 = vmatpush3.bf16.msra.mxu1 %v976_v2 }
 0x4bd   : > { %2097 = vmatprep.subr.bf16.mxu1 %v2387_v9 }
 0x4be   : > { %v2276_v62 = vpop.eup %2275 }
 0x4bf   : > { %v1076_v63 = vsel %vm862_vm3, %v2276_v62, 0.0 }
 0x4c0   : > { %1077 = vadd.xlane.f32.xlu1 %v1076_v63 }
 0x4d1   : > { %1241 = vrot.lane.b32.xlu1 %v2666_v26, %s2396_s24  ;;  %s2959_s24 = sld [smem:[#allocation28_spill]] (!%p2015_p1) }
 0x549   : > { %v1078_v3 = vpop.xlane.xlu1 %1077 }
 0x54a   : > { %2277 = vrcp.f32 %v1078_v3 }
 0x54d   : > { %v1242_v24 = vpop.permute.xlu1 %1241 }
 0x54e   : > { %v1247_v30 = vsel %vm926_vm4, %v1242_v24, 0 }
 0x557   : > { %v2278_v7 = vpop.eup %2277 }
 0x558   : > { %v1080_v12 = vmul.f32 %v2278_v7, %v2276_v62 }
 0x55a   : > { %v1081_v15 = vpack.c.bf16 %v1080_v12, %v1080_v12 }
 0x57b   : > { %v964_v5 = vpop.f32.mrf.mxu1 }
 0x57c   : > { %v970_v6 = vpack.c.bf16 %v964_v5, %v964_v5 }
 0x57d   : > { %v2083_v8 = vpop.f32.mrf.mxu1 }
 0x57e   : > { %2088 = vmatmul.mubr.msk.bf16.vlgmr.msra.gmra.mxu1 %vm862_vm3, %v970_v6 }
 0x57f   : > { %2098 = vmatpush3.bf16.msra.mxu1 %v1088_v10  ;;  %v967_v11 = vpop.f32.mrf.mxu1  ;;  %2099 = vmatprep.mubr.msk.bf16.mxu1 %vm2388_vm2, %v2387_v9 }
 0x580   : > { %2109 = vmatprep.subr.bf16.mxu1 %v2387_v9 }
 0x581   : > { %v2084_v13 = vpop.f32.mrf.mxu1 }
 0x586   : > { %2100 = vmatmul.mubr.msk.bf16.vlgmr.msra.gmra.mxu1 %vm862_vm3, %v1081_v15 }
 0x587   : > { %2110 = vmatpush3.bf16.xpose.msra.mxu1 %v1187_v16  ;;  %2111 = vmatprep.mubr.msk.bf16.mxu1 %vm2388_vm2, %v2387_v9 }
 0x588   : > { %2121 = vmatprep.subr.bf16.mxu1 %v2387_v9 }
 0x58e   : > { %2112 = vmatmul.mubr.msk.bf16.vlgmr.msra.gmra.mxu1 %vm862_vm3, %v1180_v17 }
 0x58f   : > { %2123 = vmatprep.mubr.msk.bf16.mxu1 %vm2388_vm2, %v2387_v9  ;;  %2122 = vmatpush3.bf16.msra.mxu1 %v1295_v59  ;;  %v2265_v59 = vld [vmem:[%s2628_s8 + $0x18] sm:$0xff]  }
 0x590   : > { %2133 = vmatprep.subr.bf16.mxu1 %v2387_v9 }
 0x63e   : > { %v1012_v20 = vpop.f32.mrf.mxu1 }
 0x63f   : > { %v1018_v46 = vadd.f32 %v1986_v45, %v1012_v20  ;;  %v2259_v45 = vld [vmem:[%s2614_s30 + $0x8] sm:$0xff]  }
 0x640   : > { %v2089_v21 = vpop.f32.mrf.mxu1 }
 0x642   : > { %v1015_v22 = vpop.f32.mrf.mxu1 }
 0x644   : > { %v2090_v23 = vpop.f32.mrf.mxu1 }
 0x646   : > { %v1124_v25 = vpop.f32.mrf.mxu1 }
 0x647   : > { %v1130_v27 = vpack.c.bf16 %v1124_v25, %v1124_v25 }
 0x648   : > { %v2101_v29 = vpop.f32.mrf.mxu1 }
 0x649   : > { %2106 = vmatmul.mubr.msk.bf16.vlgmr.msra.gmra.mxu0 %vm862_vm3, %v1130_v27 }
 0x64a   : > { %2116 = vmatpush3.bf16.msra.mxu0 %v1247_v30  ;;  %v1127_v31 = vpop.f32.mrf.mxu1  ;;  %2117 = vmatprep.mubr.msk.bf16.mxu0 %vm2388_vm2, %v2387_v9 }
 0x64b   : > { %2127 = vmatprep.subr.bf16.mxu0 %v2387_v9 }
 0x64c   : > { %v2102_v32 = vpop.f32.mrf.mxu1 }
 0x64e   : > { %v1223_v33 = vpop.f32.mrf.mxu1 }
 0x64f   : > { %v1224_v34 = vadd.f32 %v2689_v35, %v1223_v33 }
 0x650   : > { %v2113_v36 = vpop.f32.mrf.mxu1 }
 0x651   : > { %v1229_v37 = vsel %vm862_vm3, %v1224_v34, -inf }
 0x652   : > { %1230 = vmax.xlane.f32.xlu0 %v1229_v37  ;;  %v1226_v38 = vpop.f32.mrf.mxu1 }
 0x654   : > { %v2114_v39 = vpop.f32.mrf.mxu1 }
 0x6db   : > { %v1231_v40 = vpop.xlane.xlu0 %1230 }
 0x6dc   : > { %v1232_v41 = vsub.f32 %v1224_v34, %v1231_v40 }
 0x6de   : > { %v1233_v42 = vmul.f32 1.442695, %v1232_v41 }
 0x6e0   : > { %2279 = vpow2.f32 %v1233_v42 }
 0x6ed   : > { %v2280_v43 = vpop.eup %2279 }
 0x6ee   : > { %v1235_v44 = vsel %vm862_vm3, %v2280_v43, 0.0 }
 0x6ef   : > { %1236 = vadd.xlane.f32.xlu1 %v1235_v44 }
 0x700   : > { %1340 = vrot.lane.b32.xlu1 %v2666_v26, %s2397_s28 }
 0x704   : > { %1338 = vrot.lane.b32.xlu1 %v2668_v28, %s2398_s23 }
 0x709   : > { %v1172_v47 = vpop.f32.mrf.mxu0 }
 0x70a   : > { %v1178_v48 = vadd.f32 %v1172_v47, %v1018_v46 }
 0x70b   : > { %v2107_v49 = vpop.f32.mrf.mxu0 }
 0x70d   : > { %v1175_v50 = vpop.f32.mrf.mxu0 }
 0x70e   : > { %v2000_v50 = vld [vmem:[%s2955_s25] ss:$0 sm:$0xff] }
 0x70f   : > { %v2108_v51 = vpop.f32.mrf.mxu0 }
 0x778   : > { %v1237_v52 = vpop.xlane.xlu1 %1236 }
 0x779   : > { %2281 = vrcp.f32 %v1237_v52  ;;  %v2001_v52 = vld [vmem:[%s718_s22] ss:$0 sm:$0xff] }
 0x77c   : > { %v1341_v55 = vpop.permute.xlu1 %1340 }
 0x77d   : > { %v1346_v28 = vsel %vm862_vm3, %v1341_v55, 0 }
 0x780   : > { %v1339_v57 = vpop.permute.xlu1 %1338 }
 0x786   : > { %v2282_v53 = vpop.eup %2281 }
 0x787   : > { %v1239_v54 = vmul.f32 %v2282_v53, %v2280_v43 }
 0x789   : > { %v1240_v56 = vpack.c.bf16 %v1239_v54, %v1239_v54 }
 0x78b   : > { %2118 = vmatmul.mubr.msk.bf16.vlgmr.msra.gmra.mxu0 %vm862_vm3, %v1240_v56  ;;  %v2261_v56 = vld [vmem:[%s2628_s8 + $0x38] sm:$0xff]  }
 0x78c   : > { %2128 = vmatpush3.bf16.xpose.msra.mxu0 %v1346_v28  ;;  %2129 = vmatprep.mubr.msk.bf16.mxu0 %vm2388_vm2, %v2387_v9  ;;  %v2262_v28 = vld [vmem:[%s2628_s8 + $0x30] sm:$0xff]  }
 0x78d   : > { %2139 = vmatprep.subr.bf16.mxu0 %v2387_v9 }
 0x793   : > { %2130 = vmatmul.mubr.msk.bf16.vlgmr.msra.gmra.mxu0 %vm862_vm3, %v1339_v57  ;;  %v2263_v57 = vld [vmem:[%s2628_s8 + $0x28] sm:$0xff]  }
 0x794   : > { %2141 = vmatprep.mubr.msk.bf16.mxu0 %vm2388_vm2, %v2387_v9 }
 0x84b   : > { %v1283_v60 = vpop.f32.mrf.mxu0 }
 0x84c   : > { %v1289_v61 = vpack.c.bf16 %v1283_v60, %v1283_v60  ;;  %v2266_v60 = vld [vmem:[%s2628_s8 + $0x10] sm:$0xff]  }
 0x84d   : > { %v2119_v62 = vpop.f32.mrf.mxu0 }
 0x84e   : > { %2124 = vmatmul.mubr.msk.bf16.vlgmr.msra.gmra.mxu1 %vm862_vm3, %v1289_v61  ;;  %v2267_v61 = vld [vmem:[%s2628_s8 + $0x8] sm:$0xff]   ;;  %v2268_v62 = vld [vmem:[%s2628_s8] sm:$0xff]  }
 0x84f   : > { %v1286_v63 = vpop.f32.mrf.mxu0  ;;  %2135 = vmatprep.mubr.msk.bf16.mxu1 %vm2388_vm2, %v2387_v9 }
 0x850   : > { %v2002_v63 = vld [vmem:[%s726_s6] ss:$0 sm:$0xff] }
 0x851   : > { %v2120_v0 = vpop.f32.mrf.mxu0 }
 0x853   : > { %v1382_v2 = vpop.f32.mrf.mxu0 }
 0x854   : > { %v1383_v3 = vadd.f32 %v2689_v35, %v1382_v2 }
 0x855   : > { %v2131_v4 = vpop.f32.mrf.mxu0 }
 0x856   : > { %v1388_v5 = vsel %vm862_vm3, %v1383_v3, -inf }
 0x857   : > { %1389 = vmax.xlane.f32.xlu0 %v1388_v5  ;;  %v1385_v6 = vpop.f32.mrf.mxu0 }
 0x859   : > { %v2132_v7 = vpop.f32.mrf.mxu0 }
 0x86d   : > { %1400 = vrot.lane.b32.xlu0 %v2666_v26, %s2399_s21  ;;  %v1454_v26 = vsel %vm926_vm4, %v1449_v18, 0 }
 0x86e   : > { %2140 = vmatpush3.bf16.msra.mxu0 %v1454_v26 }
 0x86f   : > { %2153 = vmatprep.subr.bf16.mxu0 %v2387_v9 }
 0x8e0   : > { %v1390_v8 = vpop.xlane.xlu0 %1389 }
 0x8e1   : > { %v1391_v10 = vsub.f32 %v1383_v3, %v1390_v8 }
 0x8e3   : > { %v1392_v11 = vmul.f32 1.442695, %v1391_v10 }
 0x8e4   : > { %v1401_v12 = vpop.permute.xlu0 %1400 }
 0x8e5   : > { %2283 = vpow2.f32 %v1392_v11  ;;  %v1406_v13 = vsel %vm926_vm4, %v1401_v12, 0 }
 0x8e6   : > { %2134 = vmatpush3.bf16.msra.mxu1 %v1406_v13 }
 0x8e7   : > { %2145 = vmatprep.subr.bf16.mxu1 %v2387_v9 }
 0x8f2   : > { %v2284_v35 = vpop.eup %2283 }
 0x8f3   : > { %v1394_v14 = vsel %vm862_vm3, %v2284_v35, 0.0 }
 0x8f4   : > { %1395 = vadd.xlane.f32.xlu1 %v1394_v14 }
 0x90e   : > { %v1331_v15 = vpop.f32.mrf.mxu1 }
 0x90f   : > { %v1337_v16 = vadd.f32 %v1331_v15, %v1178_v48  ;;  %v2006_v15 = vld [vmem:[%s734_s7] ss:$0 sm:$0xff] }
 0x910   : > { %v2125_v17 = vpop.f32.mrf.mxu1 }
 0x912   : > { %v1334_v19 = vpop.f32.mrf.mxu1 }
 0x914   : > { %v2126_v20 = vpop.f32.mrf.mxu1 }
 0x97d   : > { %v1396_v21 = vpop.xlane.xlu1 %1395 }
 0x97e   : > { %2285 = vrcp.f32 %v1396_v21 }
 0x98b   : > { %v2286_v22 = vpop.eup %2285 }
 0x98c   : > { %v1398_v23 = vmul.f32 %v2286_v22, %v2284_v35 }
 0x98e   : > { %v1399_v24 = vpack.c.bf16 %v1398_v23, %v1398_v23 }
 0x990   : > { %2136 = vmatmul.mubr.msk.bf16.vlgmr.msra.gmra.mxu1 %vm862_vm3, %v1399_v24 }
 0x991   : > { %2149 = vmatprep.mubr.msk.bf16.mxu1 %vm2388_vm2, %v2387_v9  ;;  %2146 = vmatpush3.bf16.msra.mxu1 %v2259_v45 }
 0x992   : > { %2147 = vmatprep.subr.bf16.mxu1 %v2387_v9 }
 0xa50   : > { %v1442_v25 = vpop.f32.mrf.mxu1 }
 0xa51   : > { %v1448_v27 = vpack.c.bf16 %v1442_v25, %v1442_v25 }
 0xa52   : > { %v2137_v29 = vpop.f32.mrf.mxu1 }
 0xa53   : > { %2142 = vmatmul.mubr.msk.bf16.vlgmr.msra.gmra.mxu0 %vm862_vm3, %v1448_v27 }
 0xa54   : > { %v1445_v30 = vpop.f32.mrf.mxu1  ;;  %2169 = vmatprep.mubr.msk.bf16.mxu0 %vm2388_vm2, %v2387_v9  ;;  %2154 = vmatpush3.bf16.msra.mxu0 %v2261_v56 }
 0xa55   : > { %2155 = vmatprep.subr.bf16.mxu0 %v2387_v9 }
 0xa56   : > { %v2138_v31 = vpop.f32.mrf.mxu1 }
 0xa58   : > { %2156 = vmatpush3.bf16.msra.mxu0 %v2262_v28 }
 0xa59   : > { %2157 = vmatprep.subr.bf16.mxu0 %v2387_v9 }
 0xa5c   : > { %2158 = vmatpush3.bf16.msra.mxu0 %v2263_v57 }
 0xa5d   : > { %2159 = vmatprep.subr.bf16.mxu0 %v2387_v9 }
 0xa60   : > { %2160 = vmatpush3.bf16.msra.mxu0 %v2264_v58 }
 0xa61   : > { %2161 = vmatprep.subr.bf16.mxu0 %v2387_v9 }
 0xa64   : > { %2162 = vmatpush3.bf16.msra.mxu0 %v2265_v59 }
 0xa65   : > { %2163 = vmatprep.subr.bf16.mxu0 %v2387_v9 }
 0xa68   : > { %2164 = vmatpush3.bf16.msra.mxu0 %v2266_v60 }
 0xa69   : > { %2165 = vmatprep.subr.bf16.mxu0 %v2387_v9 }
 0xa6c   : > { %2166 = vmatpush3.bf16.msra.mxu0 %v2267_v61 }
 0xa6d   : > { %2167 = vmatprep.subr.bf16.mxu0 %v2387_v9 }
 0xa70   : > { %2168 = vmatpush3.bf16.msra.mxu0 %v2268_v62 }
 0xb13   : > { %v1490_v32 = vpop.f32.mrf.mxu0 }
 0xb14   : > { %v1496_v33 = vadd.f32 %v1490_v32, %v1337_v16 }
 0xb15   : > { %v2143_v34 = vpop.f32.mrf.mxu0 }
 0xb16   : > { %v2771_v36 = vadd.f32 %v1496_v33, %v2632_v1  ;;  %v2260_v1 = vld [vmem:[%s2614_s30] sm:$0xff]  }
 0xb17   : > { %v1493_v37 = vpop.f32.mrf.mxu0  ;;  %2148 = vmatpush3.bf16.msra.mxu1 %v2260_v1 }
 0xb18   : > { %v1500_v38 = vsel %vm747_vm1, %v2771_v36, 0.0 }
 0xb19   : > { %1501 = vadd.xlane.f32.xlu0 %v1500_v38  ;;  %v2144_v39 = vpop.f32.mrf.mxu0 }
 0xba2   : > { %v1502_v40 = vpop.xlane.xlu0 %1501 }
 0xba3   : > { %v1503_v41 = vmul.f32 0.03125, %v1502_v40 }
 0xba5   : > { %v1504_v42 = vsub.f32 %v2771_v36, %v1503_v41 }
 0xba7   : > { %v1505_v43 = vmul.f32 %v1504_v42, %v1504_v42 }
 0xba9   : > { %v1506_v44 = vsel %vm747_vm1, %v1505_v43, 0.0 }
 0xbaa   : > { %1507 = vadd.xlane.f32.xlu1 %v1506_v44 }
 0xc33   : > { %v1508_v46 = vpop.xlane.xlu1 %1507 }
 0xc34   : > { %v1509_v47 = vmul.f32 0.03125, %v1508_v46 }
 0xc36   : > { %v1510_v48 = vadd.f32 1e-05, %v1509_v47 }
 0xc38   : > { %2287 = vrsqrt.f32 %v1510_v48 }
 0xc45   : > { %v2288_v49 = vpop.eup %2287 }
 0xc46   : > { %v1512_v51 = vmul.f32 %v2288_v49, %v1504_v42 }
 0xc48   : > { %v1519_v53 = vmul.f32 %v2000_v50, %v1512_v51 }
 0xc4a   : > { %v1526_v54 = vadd.f32 %v2001_v52, %v1519_v53 }
 0xc4c   : > { %v1527_v55 = vpack.c.bf16 %v1526_v54, %v1526_v54 }
 0xc4e   : > { %2150 = vmatmul.mubr.msk.bf16.vlgmr.msra.gmra.mxu1 %vm747_vm1, %v1527_v55 }
 0xd0e   : > { %v1588_v0 = vpop.f32.mrf.mxu1 }
 0xd0f   : > { %v1589_v2 = vadd.f32 %v2002_v63, %v1588_v0 }
 0xd10   : > { %v2151_v3 = vpop.f32.mrf.mxu1 }
 0xd11   : > { %v1595_v4 = vmul.f32 0.044715, %v1589_v2  ;;  %v1594_v9 = vmul.f32 0.5, %v1589_v2 }
 0xd12   : > { %v1591_v5 = vpop.f32.mrf.mxu1 }
 0xd13   : > { %v1596_v6 = vmul.f32 %v1595_v4, %v1589_v2 }
 0xd14   : > { %v2152_v7 = vpop.f32.mrf.mxu1 }
 0xd15   : > { %v1597_v8 = vmul.f32 %v1596_v6, %v1589_v2 }
 0xd17   : > { %v1598_v10 = vadd.f32 %v1597_v8, %v1589_v2 }
 0xd19   : > { %v1599_v11 = vmul.f32 0.7978846, %v1598_v10 }
 0xd1b   : > { %2289 = vtanh.f32 %v1599_v11 }
 0xd28   : > { %v2290_v12 = vpop.eup %2289 }
 0xd29   : > { %v1601_v13 = vadd.f32 1.0, %v2290_v12 }
 0xd2b   : > { %v1602_v35 = vmul.f32 %v1601_v13, %v1594_v9 }
 0xd2d   : > { %v1603_v14 = vpack.c.bf16 %v1602_v35, %v1602_v35 }
 0xd2f   : > { %2170 = vmatmul.mubr.bf16.vlgmr.msra.gmra.mxu0 %v1603_v14 }
 0xdef   : > { %v1709_v16 = vpop.f32.mrf.mxu0 }
 0xdf0   : > { %v1710_v17 = vadd.f32 %v2006_v15, %v1709_v16 }
 0xdf1   : > { %v2171_v18 = vpop.f32.mrf.mxu0  ;;  %1720 = sbr.rel (%p2015_p1) target bundleno = 3883 (0xf2b), region = 92 }
 0xdf2   : > { %v1715_v26 = vadd.f32 %v1710_v17, %v2771_v36 }
 0xdf3   : > { %v1712_v19 = vpop.f32.mrf.mxu0 }
 0xdf4   : > { %1716 = vst.msk [vmem:[#allocation2] sm:$0xff] %vm747_vm1, %v1715_v26 }
 0xdf5   : > { %v2172_v20 = vpop.f32.mrf.mxu0 }
 0xdf6   : > { %v1723_v21 = vsel %vm747_vm1, %v1715_v26, 0.0  ;;  %v2016_v33 = vld [vmem:[%s2959_s24] ss:$0 sm:$0xff] }
 0xdf7   : > { %1724 = vadd.xlane.f32.xlu0 %v1723_v21  ;;  %v2017_v36 = vld [vmem:[%s2960_s29] ss:$0 sm:$0xff] }
 0xe80   : > { %v1725_v22 = vpop.xlane.xlu0 %1724 }
 0xe81   : > { %v1726_v23 = vmul.f32 0.03125, %v1725_v22 }
 0xe83   : > { %v1727_v24 = vsub.f32 %v1715_v26, %v1726_v23 }
 0xe85   : > { %v1728_v25 = vmul.f32 %v1727_v24, %v1727_v24 }
 0xe87   : > { %v1729_v27 = vsel %vm747_vm1, %v1728_v25, 0.0 }
 0xe88   : > { %1730 = vadd.xlane.f32.xlu0 %v1729_v27 }
 0xf11   : > { %v1731_v29 = vpop.xlane.xlu0 %1730 }
 0xf12   : > { %v1732_v30 = vmul.f32 0.03125, %v1731_v29 }
 0xf14   : > { %v1733_v31 = vadd.f32 1e-05, %v1732_v30 }
 0xf16   : > { %2291 = vrsqrt.f32 %v1733_v31 }
 0xf23   : > { %v2292_v32 = vpop.eup %2291 }
 0xf24   : > { %v1735_v34 = vmul.f32 %v2292_v32, %v1727_v24 }
 0xf26   : > { %v1742_v37 = vmul.f32 %v2016_v33, %v1735_v34 }
 0xf28   : > { %v1749_v38 = vadd.f32 %v2017_v36, %v1742_v37 }
 0xf2a   : > { %1750 = vst.msk [vmem:[%s683_s12] sm:$0xff] %vm747_vm1, %v1749_v38 }
 0xf2b PF: > { %s2961_s15 = sld [smem:[#allocation10_spill]]  ;;  %s1765_s19 = sshll.u32 %s683_s12, 4  ;;  %s1766_s19 = int_to_ptr.vmem [resolvable:$true] %s1765_s19 }
 0xf2c   : > { %s2962_s17 = sld [smem:[#allocation7_spill]]  ;;  %s2293_s4 = scalar_lea.vmem %s1766_s19, 128 }
 0xf2d   : > { %s2964_s27 = sld [smem:[#allocation30_spill]]  ;;  %p2294_p2 = scmp.ne.s32.totalorder %s1766_s19, %s2293_s4 }
 0xf2e   : > { %s2400_s8 = smov [#allocation3]  }
 0xf2f   : > { %p2295_p4 = pnand %p2294_p2, %p2535_p3  ;;  %s2297_s6 = sshll.u32 %s2400_s8, 4  ;;  %s2298_s6 = int_to_ptr.vmem [resolvable:$false] %s2297_s6 }
 0xf30   : > { %s2299_s14 = scalar_lea.vmem %s2298_s6, 256  ;;  %p2300_p6 = scmp.lt.s32.totalorder %s1766_s19, %s2298_s6 }
 0xf31   : > { %s2019_s21 = sshll.u32 %s2961_s15, 7  ;;  %p2296_p5 = pneg %p2295_p4 }
 0xf32   : > { %s2966_s22 = sand.u32 1, %s2962_s17   ;;  %p2301_p7 = scmp.lt.s32.totalorder %s2299_s14, %s2293_s4 }
 0xf33   : > { %s2965_s13 = smov %s2964_s27  ;;  %s1763_s25 = scalar_lea.hbm %s2964_s27, %s2019_s21 }
 0xf34   : > { %s1752_s30 = scalar_lea.sflag [#allocation4], %s2966_s22  ;;  %p2302_p8 = por %p2301_p7, %p2300_p6 }
 0xf36   : > { %p2303_p10 = pnand %p2302_p8, %p2296_p5 }
 0xf38   : > { %2306 = shalt.err (!%p2303_p10)
}
 0xf39   : > { %s2307_s11 = scalar_lea.hbm %s1763_s25, 128  ;;  %s2311_s7 = scalar_lea.hbm %s2965_s13, 256 }
 0xf3a   : > { %p2308_p11 = scmp.ne.s32.totalorder %s1763_s25, %s2307_s11  ;;  %p2312_p0 = scmp.lt.s32.totalorder %s1763_s25, %s2965_s13 }
 0xf3b   : > { %p2313_p1 = scmp.lt.s32.totalorder %s2311_s7, %s2307_s11 }
 0xf3c   : > { %p2309_p12 = pnand %p2308_p11, %p2535_p3 }
 0xf3d   : > { %p2314_p2 = por %p2313_p1, %p2312_p0 }
 0xf3e   : > { %p2310_p13 = pneg %p2309_p12 }
 0xf40   : > { %p2315_p4 = pnand %p2314_p2, %p2310_p13 }
 0xf42   : > { %2318 = shalt.err (!%p2315_p4)
}
 0xf43   : > { %2173 = dma.vmem_to_hbm [thread:$0]  (%p2535_p3), %s1766_s19, 128, %s1763_s25, %s1752_s30  }
 0xf44 PF: > { %s2967_s28 = sld [smem:[#allocation13_spill]] }
 0xf45   : > { %s2968_s23 = sld [smem:[#allocation6_spill]] }
 0xf4a   : > { %p2179_p5 = scmp.ge.s32.totalorder %s2967_s28, 2 }
 0xf4b   : > { %s1777_s15 = sand.u32 1, %s2968_s23  }
 0xf4c   : > { %p2176_p6 = pnand %p2179_p5, %p2545_p9  ;;  %s1778_s17 = scalar_lea.sflag [#allocation4], %s1777_s15 }
 0xf4e   : > { %p2177_p7 = pneg %p2176_p6 }
 0xf50   : > { %2352 = dma.done.wait (%p2177_p7), %s1778_s17, 128  }
 0xf51   : > { %2354 = vsyncadd (%p2177_p7), %s1778_s17, 4294967168  ;;  %s29_s28 = sadd.s32 1, %s2967_s28   ;;  %s2970_s21 = sld [smem:[#allocation7_spill]] }
 0xf52   : > { %p26_p8 = scmp.ge.s32.totalorder %s29_s28, 6   ;;  %s2971_s22 = sld [smem:[#allocation8_spill]] }
 0xf53   : > { %s2972_s23 = sld [smem:[#allocation18_spill]] }
 0xf54   : > { %s2973_s24 = sld [smem:[#allocation11_spill]]  ;;  %28 = sbr.rel (!%p26_p8) target bundleno = 17 (0x11), region = 166 }
 0xf55   : > { %s2974_s25 = sld [smem:[#allocation12_spill]] }
 0xf56   : > { %s2975_s26 = sld [smem:[#allocation14_spill]] }
 0xf57   : > { %s2976_s27 = sld [smem:[#allocation16_spill]] }
 0xf59   :  { %1783 = vsyncpa [#allocation4], 1 }
 0xf5a   :  { %1785 = vsyncpa [#allocation4 + $0x1], 1 }

</bundles_post_ra>
